<compile_context>
chip_gen: v5e
topology: v5e:2x2
jax: 0.10.0
libtpu: 0.0.40
codegen_flags: <defaults>
</compile_context>

<pallas_src>
import functools

import jax
import jax.numpy as jnp
from jax import lax
from jax.experimental import pallas as pl
from jax.experimental.pallas import tpu as pltpu


def _lstm_kernel(seq_len, mask_tail,
                 x_ref,                    # (Tc, Bp, E)  bf16 embedded chunk
                 wih0_ref,                 # (E, 4H)      bf16 (cols: i,f,o,g)
                 whh0_ref,                 # (H, 4H)      bf16
                 b0_ref,                   # (1, 4H)      f32  (b_ih + b_hh)
                 w1_ref,                   # (2H, 4H)     bf16 [W_ih1; W_hh1]
                 b1_ref,                   # (1, 4H)      f32
                 hout_ref,                 # (Bp, H)      f32  last layer-1 h
                 xg_ref,                   # (Tc, Bp, 4H) f32  scratch
                 h0_ref, c0_ref, h1_ref, c1_ref):  # (Bp, H) f32 carries
    Tc, Bp, E = x_ref.shape
    H = hout_ref.shape[1]
    t_chunk = pl.program_id(0)

    @pl.when(t_chunk == 0)
    def _():
        z = jnp.zeros((Bp, H), jnp.float32)
        h0_ref[...] = z
        c0_ref[...] = z
        h1_ref[...] = z
        c1_ref[...] = z

    # Weights stay VMEM/vreg resident; bias broadcast hoisted out of the loop.
    whh0 = whh0_ref[...]
    w1 = w1_ref[...]
    b1 = jnp.broadcast_to(b1_ref[...], (Bp, 4 * H))

    # Hoisted layer-0 input projection: one big matmul off the serial path.
    xg = jnp.dot(x_ref[...].reshape(Tc * Bp, E), wih0_ref[...],
                 preferred_element_type=jnp.float32)
    xg_ref[...] = xg.reshape(Tc, Bp, 4 * H) + b0_ref[...]

    def gates_to_state(gates, c_prev):
        # Column order (i, f, o, g): one sigmoid over 3H, one tanh over H.
        sig = jax.nn.sigmoid(gates[:, 0:3 * H])
        g = jnp.tanh(gates[:, 3 * H:4 * H])
        i = sig[:, 0 * H:1 * H]
        f = sig[:, 1 * H:2 * H]
        o = sig[:, 2 * H:3 * H]
        c_new = f * c_prev + i * g
        h_new = o * jnp.tanh(c_new)
        return h_new, c_new

    def step(t, carry):
        h0, c0, h1, c1 = carry
        # Layer 0: only the recurrent dot is on the serial path.
        g0 = xg_ref[t] + jnp.dot(h0.astype(jnp.bfloat16), whh0,
                                 preferred_element_type=jnp.float32)
        h0n, c0n = gates_to_state(g0, c0)
        # Inter-layer dropout (p=0.5) is identity in eval mode.
        # Layer 1: single fused dot over concat([input, h_prev]).
        inp1 = jnp.concatenate([h0n, h1], axis=-1).astype(jnp.bfloat16)
        g1 = jnp.dot(inp1, w1, preferred_element_type=jnp.float32) + b1
        h1n, c1n = gates_to_state(g1, c1)
        if mask_tail:  # trace-time branch; only when T was padded to Tc chunks
            valid = (t_chunk * Tc + t) < seq_len
            h0n = jnp.where(valid, h0n, h0)
            c0n = jnp.where(valid, c0n, c0)
            h1n = jnp.where(valid, h1n, h1)
            c1n = jnp.where(valid, c1n, c1)
        return (h0n, c0n, h1n, c1n)

    carry0 = (h0_ref[...], c0_ref[...], h1_ref[...], c1_ref[...])
    h0, c0, h1, c1 = lax.fori_loop(0, Tc, step, carry0, unroll=True)
    h0_ref[...] = h0
    c0_ref[...] = c0
    h1_ref[...] = h1
    c1_ref[...] = c1

    @pl.when(t_chunk == pl.num_programs(0) - 1)
    def _():
        hout_ref[...] = h1


def lstm_forward(token_ids, params):
    """token_ids: (B, T) int32.  Returns (B, output_dim) float32."""
    emb_table = params["embedding"]              # (V, E) f32
    B, T = token_ids.shape
    E = emb_table.shape[1]
    H = params["whh0_t"].shape[0]

    # Embedding lookup staged directly time-major; MXU operands in bf16.
    x = jnp.take(emb_table, token_ids.T, axis=0).astype(jnp.bfloat16)  # (T,B,E)

    # Pad batch to a sublane multiple (8); padded rows are independent & sliced off.
    Bp = max(8, ((B + 7) // 8) * 8)
    if Bp != B:
        x = jnp.pad(x, ((0, 0), (0, Bp - B), (0, 0)))

    # Time-chunk grid: bounded VMEM, double-buffered x DMA overlapped w/ compute.
    Tc = min(T, 32)
    nt = pl.cdiv(T, Tc)
    Tp = nt * Tc
    mask_tail = Tp != T
    if mask_tail:
        x = jnp.pad(x, ((0, Tp - T), (0, 0), (0, 0)))

    kernel = functools.partial(_lstm_kernel, T, mask_tail)

    h_last = pl.pallas_call(
        kernel,
        out_shape=jax.ShapeDtypeStruct((Bp, H), jnp.float32),
        grid_spec=pltpu.PrefetchScalarGridSpec(
            num_scalar_prefetch=0,
            grid=(nt,),
            in_specs=[
                pl.BlockSpec((Tc, Bp, E), lambda t: (t, 0, 0)),
                pl.BlockSpec((E, 4 * H), lambda t: (0, 0)),
                pl.BlockSpec((H, 4 * H), lambda t: (0, 0)),
                pl.BlockSpec((1, 4 * H), lambda t: (0, 0)),
                pl.BlockSpec((2 * H, 4 * H), lambda t: (0, 0)),
                pl.BlockSpec((1, 4 * H), lambda t: (0, 0)),
            ],
            out_specs=pl.BlockSpec((Bp, H), lambda t: (0, 0)),
            scratch_shapes=[
                pltpu.VMEM((Tc, Bp, 4 * H), jnp.float32),   # precomputed x-gates
                pltpu.VMEM((Bp, H), jnp.float32),           # h0
                pltpu.VMEM((Bp, H), jnp.float32),           # c0
                pltpu.VMEM((Bp, H), jnp.float32),           # h1
                pltpu.VMEM((Bp, H), jnp.float32),           # c1
            ]),
        compiler_params=pltpu.CompilerParams(
            dimension_semantics=("arbitrary",),
            vmem_limit_bytes=32 * 1024 * 1024),
    )(x,
      params["wih0_t"], params["whh0_t"], params["b0"],
      params["w1_t"], params["b1"])

    h_last = h_last[:B]                          # drop batch padding
    # Pre-fc dropout (p=0.3) is identity in eval mode.
    # Final fc in XLA: (B,H)x(H,O) with O=4 lanes is cheaper than a
    # lane-sparse masked store inside the kernel.
    return jnp.dot(h_last, params["wfc_t"]) + params["bfc"]


def init_params(key, vocab_size, embedding_dim, hidden_dim, output_dim):
    """PyTorch-style init; weights stored pre-transposed, gate-permuted (i,f,o,g),
    matmul weights in bf16."""
    ks = jax.random.split(key, 11)
    H, E, O = hidden_dim, embedding_dim, output_dim
    s = 1.0 / jnp.sqrt(H)
    u = lambda k, shape: jax.random.uniform(k, shape, jnp.float32, -s, s)

    def perm(w_t):  # columns (i, f, g, o) -> (i, f, o, g)
        return jnp.concatenate(
            [w_t[:, 0:2 * H], w_t[:, 3 * H:4 * H], w_t[:, 2 * H:3 * H]], axis=-1)

    # layer 0: W_ih (4H,E) -> (E,4H); W_hh (4H,H) -> (H,4H)
    wih0_t = perm(u(ks[1], (4 * H, E)).T).astype(jnp.bfloat16)
    whh0_t = perm(u(ks[2], (4 * H, H)).T).astype(jnp.bfloat16)
    b0 = perm(u(ks[3], (1, 4 * H)) + u(ks[4], (1, 4 * H)))          # b_ih + b_hh
    # layer 1: stacked [W_ih1^T ; W_hh1^T] -> (2H, 4H)
    w1_t = perm(jnp.concatenate([u(ks[5], (4 * H, H)).T,
                                 u(ks[6], (4 * H, H)).T], axis=0)).astype(jnp.bfloat16)
    b1 = perm(u(ks[7], (1, 4 * H)) + u(ks[8], (1, 4 * H)))
    return {
        "embedding": jax.random.normal(ks[0], (vocab_size, E), jnp.float32),
        "wih0_t": wih0_t, "whh0_t": whh0_t, "b0": b0,
        "w1_t": w1_t, "b1": b1,
        # fc: W (O,H) -> stored (H,O)
        "wfc_t": u(ks[9], (O, H)).T,
        "bfc": u(ks[10], (1, O)),
    }


if __name__ == "__main__":
    vocab_size, embedding_dim, hidden_dim, output_dim = 100, 16, 32, 4
    B, T = 4, 8

    key = jax.random.PRNGKey(0)
    k_param, k_tok = jax.random.split(key)
    params = init_params(k_param, vocab_size, embedding_dim, hidden_dim, output_dim)
    token_ids = jax.random.randint(k_tok, (B, T), 0, vocab_size, dtype=jnp.int32)

    out = lstm_forward(token_ids, params)
    jax.block_until_ready(out)
    assert out.shape == (B, output_dim)
    print("KERNEL_OK")
</pallas_src>

<mosaic_0001>
module attributes {stable_mosaic.version = 11 : i64} {
  func.func @_lstm_kernel(%arg0: i32, %arg1: memref<8x8x16xbf16, #tpu.memory_space<vmem>>, %arg2: memref<16x128xbf16, #tpu.memory_space<vmem>>, %arg3: memref<32x128xbf16, #tpu.memory_space<vmem>>, %arg4: memref<1x128xf32, #tpu.memory_space<vmem>>, %arg5: memref<64x128xbf16, #tpu.memory_space<vmem>>, %arg6: memref<1x128xf32, #tpu.memory_space<vmem>>, %arg7: memref<8x32xf32, #tpu.memory_space<vmem>>, %arg8: memref<8x8x128xf32, #tpu.memory_space<vmem>>, %arg9: memref<8x32xf32, #tpu.memory_space<vmem>>, %arg10: memref<8x32xf32, #tpu.memory_space<vmem>>, %arg11: memref<8x32xf32, #tpu.memory_space<vmem>>, %arg12: memref<8x32xf32, #tpu.memory_space<vmem>>) attributes {dimension_semantics = [#tpu.dimension_semantics<arbitrary>], iteration_bounds = array<i64: 1>, scalar_prefetch = 0 : i64, scratch_operands = 5 : i64, tpu.core_type = #tpu.core_type<tc>, window_params = [{transform_indices = @transform_0, window_bounds = array<i64: 8, 8, 16>}, {pipeline_mode = #tpu.pipeline_mode<synchronous>, transform_indices = @transform_1, window_bounds = array<i64: 16, 128>}, {pipeline_mode = #tpu.pipeline_mode<synchronous>, transform_indices = @transform_2, window_bounds = array<i64: 32, 128>}, {pipeline_mode = #tpu.pipeline_mode<synchronous>, transform_indices = @transform_3, window_bounds = array<i64: 1, 128>}, {pipeline_mode = #tpu.pipeline_mode<synchronous>, transform_indices = @transform_4, window_bounds = array<i64: 64, 128>}, {pipeline_mode = #tpu.pipeline_mode<synchronous>, transform_indices = @transform_5, window_bounds = array<i64: 1, 128>}, {pipeline_mode = #tpu.pipeline_mode<synchronous>, transform_indices = @transform_6, window_bounds = array<i64: 8, 32>}]} {
    %c0_i32 = arith.constant 0 : i32
    %0 = arith.cmpi eq, %arg0, %c0_i32 : i32
    %1 = arith.extui %0 : i1 to i32
    %c0_i32_0 = arith.constant 0 : i32
    %2 = arith.cmpi ne, %1, %c0_i32_0 : i32
    scf.if %2 {
      %cst_83 = arith.constant 0.000000e+00 : f32
      %365 = vector.broadcast %cst_83 : f32 to vector<8x32xf32>
      %c0_84 = arith.constant 0 : index
      %c0_85 = arith.constant 0 : index
      %366 = vector.load %arg9[%c0_84, %c0_85] : memref<8x32xf32, #tpu.memory_space<vmem>>, vector<8x32xf32>
      tpu.vector_store %arg9[%c0_84, %c0_85], %365 {strides = array<i32>} : memref<8x32xf32, #tpu.memory_space<vmem>>, vector<8x32xf32>,
      %c0_86 = arith.constant 0 : index
      %c0_87 = arith.constant 0 : index
      %367 = vector.load %arg10[%c0_86, %c0_87] : memref<8x32xf32, #tpu.memory_space<vmem>>, vector<8x32xf32>
      tpu.vector_store %arg10[%c0_86, %c0_87], %365 {strides = array<i32>} : memref<8x32xf32, #tpu.memory_space<vmem>>, vector<8x32xf32>,
      %c0_88 = arith.constant 0 : index
      %c0_89 = arith.constant 0 : index
      %368 = vector.load %arg11[%c0_88, %c0_89] : memref<8x32xf32, #tpu.memory_space<vmem>>, vector<8x32xf32>
      tpu.vector_store %arg11[%c0_88, %c0_89], %365 {strides = array<i32>} : memref<8x32xf32, #tpu.memory_space<vmem>>, vector<8x32xf32>,
      %c0_90 = arith.constant 0 : index
      %c0_91 = arith.constant 0 : index
      %369 = vector.load %arg12[%c0_90, %c0_91] : memref<8x32xf32, #tpu.memory_space<vmem>>, vector<8x32xf32>
      tpu.vector_store %arg12[%c0_90, %c0_91], %365 {strides = array<i32>} : memref<8x32xf32, #tpu.memory_space<vmem>>, vector<8x32xf32>,
    } else {
    }
    %c0 = arith.constant 0 : index
    %c0_1 = arith.constant 0 : index
    %3 = vector.load %arg3[%c0, %c0_1] : memref<32x128xbf16, #tpu.memory_space<vmem>>, vector<32x128xbf16>
    %c0_2 = arith.constant 0 : index
    %c0_3 = arith.constant 0 : index
    %4 = vector.load %arg5[%c0_2, %c0_3] : memref<64x128xbf16, #tpu.memory_space<vmem>>, vector<64x128xbf16>
    %c0_4 = arith.constant 0 : index
    %c0_5 = arith.constant 0 : index
    %5 = vector.load %arg6[%c0_4, %c0_5] : memref<1x128xf32, #tpu.memory_space<vmem>>, vector<1x128xf32>
    %6 = vector.shape_cast %5 : vector<1x128xf32> to vector<1x128xf32>
    %7 = vector.broadcast %6 : vector<1x128xf32> to vector<8x128xf32>
    %c0_6 = arith.constant 0 : index
    %c0_7 = arith.constant 0 : index
    %c0_8 = arith.constant 0 : index
    %8 = vector.load %arg1[%c0_6, %c0_7, %c0_8] : memref<8x8x16xbf16, #tpu.memory_space<vmem>>, vector<8x8x16xbf16>
    %9 = vector.shape_cast %8 : vector<8x8x16xbf16> to vector<64x16xbf16>
    %c0_9 = arith.constant 0 : index
    %c0_10 = arith.constant 0 : index
    %10 = vector.load %arg2[%c0_9, %c0_10] : memref<16x128xbf16, #tpu.memory_space<vmem>>, vector<16x128xbf16>
    %cst = arith.constant dense<0.000000e+00> : vector<64x128xf32>
    %11 = tpu.matmul %9, %10, %cst {dimension_numbers = #tpu.dot_dimension_numbers<[1], [0], [0], [1], [0, 0, 1, 1], [], []>} : vector<64x16xbf16>, vector<16x128xbf16>, vector<64x128xf32> -> vector<64x128xf32>
    %12 = vector.shape_cast %11 : vector<64x128xf32> to vector<8x8x128xf32>
    %c0_11 = arith.constant 0 : index
    %c0_12 = arith.constant 0 : index
    %13 = vector.load %arg4[%c0_11, %c0_12] : memref<1x128xf32, #tpu.memory_space<vmem>>, vector<1x128xf32>
    %14 = vector.shape_cast %13 : vector<1x128xf32> to vector<1x1x128xf32>
    %15 = vector.broadcast %14 : vector<1x1x128xf32> to vector<8x8x128xf32>
    %16 = arith.addf %12, %15 : vector<8x8x128xf32>
    %c0_13 = arith.constant 0 : index
    %c0_14 = arith.constant 0 : index
    %c0_15 = arith.constant 0 : index
    %17 = vector.load %arg8[%c0_13, %c0_14, %c0_15] : memref<8x8x128xf32, #tpu.memory_space<vmem>>, vector<8x8x128xf32>
    tpu.vector_store %arg8[%c0_13, %c0_14, %c0_15], %16 {strides = array<i32>} : memref<8x8x128xf32, #tpu.memory_space<vmem>>, vector<8x8x128xf32>,
    %c0_16 = arith.constant 0 : index
    %c0_17 = arith.constant 0 : index
    %18 = vector.load %arg9[%c0_16, %c0_17] : memref<8x32xf32, #tpu.memory_space<vmem>>, vector<8x32xf32>
    %c0_18 = arith.constant 0 : index
    %c0_19 = arith.constant 0 : index
    %19 = vector.load %arg10[%c0_18, %c0_19] : memref<8x32xf32, #tpu.memory_space<vmem>>, vector<8x32xf32>
    %c0_20 = arith.constant 0 : index
    %c0_21 = arith.constant 0 : index
    %20 = vector.load %arg11[%c0_20, %c0_21] : memref<8x32xf32, #tpu.memory_space<vmem>>, vector<8x32xf32>
    %c0_22 = arith.constant 0 : index
    %c0_23 = arith.constant 0 : index
    %21 = vector.load %arg12[%c0_22, %c0_23] : memref<8x32xf32, #tpu.memory_space<vmem>>, vector<8x32xf32>
    %c0_i32_24 = arith.constant 0 : i32
    %22 = arith.index_cast %c0_i32_24 : i32 to index
    %c0_25 = arith.constant 0 : index
    %c0_26 = arith.constant 0 : index
    %23 = vector.load %arg8[%22, %c0_25, %c0_26] : memref<8x8x128xf32, #tpu.memory_space<vmem>>, vector<1x8x128xf32>
    %24 = vector.shape_cast %23 : vector<1x8x128xf32> to vector<8x128xf32>
    %25 = arith.truncf %18 : vector<8x32xf32> to vector<8x32xbf16>
    %cst_27 = arith.constant dense<0.000000e+00> : vector<8x128xf32>
    %26 = tpu.matmul %25, %3, %cst_27 {dimension_numbers = #tpu.dot_dimension_numbers<[1], [0], [0], [1], [0, 0, 1, 1], [], []>} : vector<8x32xbf16>, vector<32x128xbf16>, vector<8x128xf32> -> vector<8x128xf32>
    %27 = arith.addf %24, %26 : vector<8x128xf32>
    %28 = vector.extract_strided_slice %27 {offsets = [0, 0], sizes = [8, 96], strides = [1, 1]} : vector<8x128xf32> to vector<8x96xf32>
    %29 = arith.negf %28 : vector<8x96xf32>
    %30 = math.exp %29 : vector<8x96xf32>
    %cst_28 = arith.constant 1.000000e+00 : f32
    %31 = vector.broadcast %cst_28 : f32 to vector<8x96xf32>
    %32 = arith.addf %31, %30 : vector<8x96xf32>
    %33 = arith.divf %31, %32 : vector<8x96xf32>
    %34 = vector.extract_strided_slice %27 {offsets = [0, 96], sizes = [8, 32], strides = [1, 1]} : vector<8x128xf32> to vector<8x32xf32>
    %35 = math.tanh %34 : vector<8x32xf32>
    %36 = vector.extract_strided_slice %33 {offsets = [0, 0], sizes = [8, 32], strides = [1, 1]} : vector<8x96xf32> to vector<8x32xf32>
    %37 = vector.extract_strided_slice %33 {offsets = [0, 32], sizes = [8, 32], strides = [1, 1]} : vector<8x96xf32> to vector<8x32xf32>
    %38 = vector.extract_strided_slice %33 {offsets = [0, 64], sizes = [8, 32], strides = [1, 1]} : vector<8x96xf32> to vector<8x32xf32>
    %39 = arith.mulf %37, %19 : vector<8x32xf32>
    %40 = arith.mulf %36, %35 : vector<8x32xf32>
    %41 = arith.addf %39, %40 : vector<8x32xf32>
    %42 = math.tanh %41 : vector<8x32xf32>
    %43 = arith.mulf %38, %42 : vector<8x32xf32>
    %44 = tpu.concatenate %43, %20 in 1 : vector<8x32xf32>, vector<8x32xf32> -> vector<8x64xf32>
    %45 = arith.truncf %44 : vector<8x64xf32> to vector<8x64xbf16>
    %cst_29 = arith.constant dense<0.000000e+00> : vector<8x128xf32>
    %46 = tpu.matmul %45, %4, %cst_29 {dimension_numbers = #tpu.dot_dimension_numbers<[1], [0], [0], [1], [0, 0, 1, 1], [], []>} : vector<8x64xbf16>, vector<64x128xbf16>, vector<8x128xf32> -> vector<8x128xf32>
    %47 = arith.addf %46, %7 : vector<8x128xf32>
    %48 = vector.extract_strided_slice %47 {offsets = [0, 0], sizes = [8, 96], strides = [1, 1]} : vector<8x128xf32> to vector<8x96xf32>
    %49 = arith.negf %48 : vector<8x96xf32>
    %50 = math.exp %49 : vector<8x96xf32>
    %cst_30 = arith.constant 1.000000e+00 : f32
    %51 = vector.broadcast %cst_30 : f32 to vector<8x96xf32>
    %52 = arith.addf %51, %50 : vector<8x96xf32>
    %53 = arith.divf %51, %52 : vector<8x96xf32>
    %54 = vector.extract_strided_slice %47 {offsets = [0, 96], sizes = [8, 32], strides = [1, 1]} : vector<8x128xf32> to vector<8x32xf32>
    %55 = math.tanh %54 : vector<8x32xf32>
    %56 = vector.extract_strided_slice %53 {offsets = [0, 0], sizes = [8, 32], strides = [1, 1]} : vector<8x96xf32> to vector<8x32xf32>
    %57 = vector.extract_strided_slice %53 {offsets = [0, 32], sizes = [8, 32], strides = [1, 1]} : vector<8x96xf32> to vector<8x32xf32>
    %58 = vector.extract_strided_slice %53 {offsets = [0, 64], sizes = [8, 32], strides = [1, 1]} : vector<8x96xf32> to vector<8x32xf32>
    %59 = arith.mulf %57, %21 : vector<8x32xf32>
    %60 = arith.mulf %56, %55 : vector<8x32xf32>
    %61 = arith.addf %59, %60 : vector<8x32xf32>
    %62 = math.tanh %61 : vector<8x32xf32>
    %63 = arith.mulf %58, %62 : vector<8x32xf32>
    %c1_i32 = arith.constant 1 : i32
    %64 = arith.index_cast %c1_i32 : i32 to index
    %c0_31 = arith.constant 0 : index
    %c0_32 = arith.constant 0 : index
    %65 = vector.load %arg8[%64, %c0_31, %c0_32] : memref<8x8x128xf32, #tpu.memory_space<vmem>>, vector<1x8x128xf32>
    %66 = vector.shape_cast %65 : vector<1x8x128xf32> to vector<8x128xf32>
    %67 = arith.truncf %43 : vector<8x32xf32> to vector<8x32xbf16>
    %cst_33 = arith.constant dense<0.000000e+00> : vector<8x128xf32>
    %68 = tpu.matmul %67, %3, %cst_33 {dimension_numbers = #tpu.dot_dimension_numbers<[1], [0], [0], [1], [0, 0, 1, 1], [], []>} : vector<8x32xbf16>, vector<32x128xbf16>, vector<8x128xf32> -> vector<8x128xf32>
    %69 = arith.addf %66, %68 : vector<8x128xf32>
    %70 = vector.extract_strided_slice %69 {offsets = [0, 0], sizes = [8, 96], strides = [1, 1]} : vector<8x128xf32> to vector<8x96xf32>
    %71 = arith.negf %70 : vector<8x96xf32>
    %72 = math.exp %71 : vector<8x96xf32>
    %cst_34 = arith.constant 1.000000e+00 : f32
    %73 = vector.broadcast %cst_34 : f32 to vector<8x96xf32>
    %74 = arith.addf %73, %72 : vector<8x96xf32>
    %75 = arith.divf %73, %74 : vector<8x96xf32>
    %76 = vector.extract_strided_slice %69 {offsets = [0, 96], sizes = [8, 32], strides = [1, 1]} : vector<8x128xf32> to vector<8x32xf32>
    %77 = math.tanh %76 : vector<8x32xf32>
    %78 = vector.extract_strided_slice %75 {offsets = [0, 0], sizes = [8, 32], strides = [1, 1]} : vector<8x96xf32> to vector<8x32xf32>
    %79 = vector.extract_strided_slice %75 {offsets = [0, 32], sizes = [8, 32], strides = [1, 1]} : vector<8x96xf32> to vector<8x32xf32>
    %80 = vector.extract_strided_slice %75 {offsets = [0, 64], sizes = [8, 32], strides = [1, 1]} : vector<8x96xf32> to vector<8x32xf32>
    %81 = arith.mulf %79, %41 : vector<8x32xf32>
    %82 = arith.mulf %78, %77 : vector<8x32xf32>
    %83 = arith.addf %81, %82 : vector<8x32xf32>
    %84 = math.tanh %83 : vector<8x32xf32>
    %85 = arith.mulf %80, %84 : vector<8x32xf32>
    %86 = tpu.concatenate %85, %63 in 1 : vector<8x32xf32>, vector<8x32xf32> -> vector<8x64xf32>
    %87 = arith.truncf %86 : vector<8x64xf32> to vector<8x64xbf16>
    %cst_35 = arith.constant dense<0.000000e+00> : vector<8x128xf32>
    %88 = tpu.matmul %87, %4, %cst_35 {dimension_numbers = #tpu.dot_dimension_numbers<[1], [0], [0], [1], [0, 0, 1, 1], [], []>} : vector<8x64xbf16>, vector<64x128xbf16>, vector<8x128xf32> -> vector<8x128xf32>
    %89 = arith.addf %88, %7 : vector<8x128xf32>
    %90 = vector.extract_strided_slice %89 {offsets = [0, 0], sizes = [8, 96], strides = [1, 1]} : vector<8x128xf32> to vector<8x96xf32>
    %91 = arith.negf %90 : vector<8x96xf32>
    %92 = math.exp %91 : vector<8x96xf32>
    %cst_36 = arith.constant 1.000000e+00 : f32
    %93 = vector.broadcast %cst_36 : f32 to vector<8x96xf32>
    %94 = arith.addf %93, %92 : vector<8x96xf32>
    %95 = arith.divf %93, %94 : vector<8x96xf32>
    %96 = vector.extract_strided_slice %89 {offsets = [0, 96], sizes = [8, 32], strides = [1, 1]} : vector<8x128xf32> to vector<8x32xf32>
    %97 = math.tanh %96 : vector<8x32xf32>
    %98 = vector.extract_strided_slice %95 {offsets = [0, 0], sizes = [8, 32], strides = [1, 1]} : vector<8x96xf32> to vector<8x32xf32>
    %99 = vector.extract_strided_slice %95 {offsets = [0, 32], sizes = [8, 32], strides = [1, 1]} : vector<8x96xf32> to vector<8x32xf32>
    %100 = vector.extract_strided_slice %95 {offsets = [0, 64], sizes = [8, 32], strides = [1, 1]} : vector<8x96xf32> to vector<8x32xf32>
    %101 = arith.mulf %99, %61 : vector<8x32xf32>
    %102 = arith.mulf %98, %97 : vector<8x32xf32>
    %103 = arith.addf %101, %102 : vector<8x32xf32>
    %104 = math.tanh %103 : vector<8x32xf32>
    %105 = arith.mulf %100, %104 : vector<8x32xf32>
    %c2_i32 = arith.constant 2 : i32
    %106 = arith.index_cast %c2_i32 : i32 to index
    %c0_37 = arith.constant 0 : index
    %c0_38 = arith.constant 0 : index
    %107 = vector.load %arg8[%106, %c0_37, %c0_38] : memref<8x8x128xf32, #tpu.memory_space<vmem>>, vector<1x8x128xf32>
    %108 = vector.shape_cast %107 : vector<1x8x128xf32> to vector<8x128xf32>
    %109 = arith.truncf %85 : vector<8x32xf32> to vector<8x32xbf16>
    %cst_39 = arith.constant dense<0.000000e+00> : vector<8x128xf32>
    %110 = tpu.matmul %109, %3, %cst_39 {dimension_numbers = #tpu.dot_dimension_numbers<[1], [0], [0], [1], [0, 0, 1, 1], [], []>} : vector<8x32xbf16>, vector<32x128xbf16>, vector<8x128xf32> -> vector<8x128xf32>
    %111 = arith.addf %108, %110 : vector<8x128xf32>
    %112 = vector.extract_strided_slice %111 {offsets = [0, 0], sizes = [8, 96], strides = [1, 1]} : vector<8x128xf32> to vector<8x96xf32>
    %113 = arith.negf %112 : vector<8x96xf32>
    %114 = math.exp %113 : vector<8x96xf32>
    %cst_40 = arith.constant 1.000000e+00 : f32
    %115 = vector.broadcast %cst_40 : f32 to vector<8x96xf32>
    %116 = arith.addf %115, %114 : vector<8x96xf32>
    %117 = arith.divf %115, %116 : vector<8x96xf32>
    %118 = vector.extract_strided_slice %111 {offsets = [0, 96], sizes = [8, 32], strides = [1, 1]} : vector<8x128xf32> to vector<8x32xf32>
    %119 = math.tanh %118 : vector<8x32xf32>
    %120 = vector.extract_strided_slice %117 {offsets = [0, 0], sizes = [8, 32], strides = [1, 1]} : vector<8x96xf32> to vector<8x32xf32>
    %121 = vector.extract_strided_slice %117 {offsets = [0, 32], sizes = [8, 32], strides = [1, 1]} : vector<8x96xf32> to vector<8x32xf32>
    %122 = vector.extract_strided_slice %117 {offsets = [0, 64], sizes = [8, 32], strides = [1, 1]} : vector<8x96xf32> to vector<8x32xf32>
    %123 = arith.mulf %121, %83 : vector<8x32xf32>
    %124 = arith.mulf %120, %119 : vector<8x32xf32>
    %125 = arith.addf %123, %124 : vector<8x32xf32>
    %126 = math.tanh %125 : vector<8x32xf32>
    %127 = arith.mulf %122, %126 : vector<8x32xf32>
    %128 = tpu.concatenate %127, %105 in 1 : vector<8x32xf32>, vector<8x32xf32> -> vector<8x64xf32>
    %129 = arith.truncf %128 : vector<8x64xf32> to vector<8x64xbf16>
    %cst_41 = arith.constant dense<0.000000e+00> : vector<8x128xf32>
    %130 = tpu.matmul %129, %4, %cst_41 {dimension_numbers = #tpu.dot_dimension_numbers<[1], [0], [0], [1], [0, 0, 1, 1], [], []>} : vector<8x64xbf16>, vector<64x128xbf16>, vector<8x128xf32> -> vector<8x128xf32>
    %131 = arith.addf %130, %7 : vector<8x128xf32>
    %132 = vector.extract_strided_slice %131 {offsets = [0, 0], sizes = [8, 96], strides = [1, 1]} : vector<8x128xf32> to vector<8x96xf32>
    %133 = arith.negf %132 : vector<8x96xf32>
    %134 = math.exp %133 : vector<8x96xf32>
    %cst_42 = arith.constant 1.000000e+00 : f32
    %135 = vector.broadcast %cst_42 : f32 to vector<8x96xf32>
    %136 = arith.addf %135, %134 : vector<8x96xf32>
    %137 = arith.divf %135, %136 : vector<8x96xf32>
    %138 = vector.extract_strided_slice %131 {offsets = [0, 96], sizes = [8, 32], strides = [1, 1]} : vector<8x128xf32> to vector<8x32xf32>
    %139 = math.tanh %138 : vector<8x32xf32>
    %140 = vector.extract_strided_slice %137 {offsets = [0, 0], sizes = [8, 32], strides = [1, 1]} : vector<8x96xf32> to vector<8x32xf32>
    %141 = vector.extract_strided_slice %137 {offsets = [0, 32], sizes = [8, 32], strides = [1, 1]} : vector<8x96xf32> to vector<8x32xf32>
    %142 = vector.extract_strided_slice %137 {offsets = [0, 64], sizes = [8, 32], strides = [1, 1]} : vector<8x96xf32> to vector<8x32xf32>
    %143 = arith.mulf %141, %103 : vector<8x32xf32>
    %144 = arith.mulf %140, %139 : vector<8x32xf32>
    %145 = arith.addf %143, %144 : vector<8x32xf32>
    %146 = math.tanh %145 : vector<8x32xf32>
    %147 = arith.mulf %142, %146 : vector<8x32xf32>
    %c3_i32 = arith.constant 3 : i32
    %148 = arith.index_cast %c3_i32 : i32 to index
    %c0_43 = arith.constant 0 : index
    %c0_44 = arith.constant 0 : index
    %149 = vector.load %arg8[%148, %c0_43, %c0_44] : memref<8x8x128xf32, #tpu.memory_space<vmem>>, vector<1x8x128xf32>
    %150 = vector.shape_cast %149 : vector<1x8x128xf32> to vector<8x128xf32>
    %151 = arith.truncf %127 : vector<8x32xf32> to vector<8x32xbf16>
    %cst_45 = arith.constant dense<0.000000e+00> : vector<8x128xf32>
    %152 = tpu.matmul %151, %3, %cst_45 {dimension_numbers = #tpu.dot_dimension_numbers<[1], [0], [0], [1], [0, 0, 1, 1], [], []>} : vector<8x32xbf16>, vector<32x128xbf16>, vector<8x128xf32> -> vector<8x128xf32>
    %153 = arith.addf %150, %152 : vector<8x128xf32>
    %154 = vector.extract_strided_slice %153 {offsets = [0, 0], sizes = [8, 96], strides = [1, 1]} : vector<8x128xf32> to vector<8x96xf32>
    %155 = arith.negf %154 : vector<8x96xf32>
    %156 = math.exp %155 : vector<8x96xf32>
    %cst_46 = arith.constant 1.000000e+00 : f32
    %157 = vector.broadcast %cst_46 : f32 to vector<8x96xf32>
    %158 = arith.addf %157, %156 : vector<8x96xf32>
    %159 = arith.divf %157, %158 : vector<8x96xf32>
    %160 = vector.extract_strided_slice %153 {offsets = [0, 96], sizes = [8, 32], strides = [1, 1]} : vector<8x128xf32> to vector<8x32xf32>
    %161 = math.tanh %160 : vector<8x32xf32>
    %162 = vector.extract_strided_slice %159 {offsets = [0, 0], sizes = [8, 32], strides = [1, 1]} : vector<8x96xf32> to vector<8x32xf32>
    %163 = vector.extract_strided_slice %159 {offsets = [0, 32], sizes = [8, 32], strides = [1, 1]} : vector<8x96xf32> to vector<8x32xf32>
    %164 = vector.extract_strided_slice %159 {offsets = [0, 64], sizes = [8, 32], strides = [1, 1]} : vector<8x96xf32> to vector<8x32xf32>
    %165 = arith.mulf %163, %125 : vector<8x32xf32>
    %166 = arith.mulf %162, %161 : vector<8x32xf32>
    %167 = arith.addf %165, %166 : vector<8x32xf32>
    %168 = math.tanh %167 : vector<8x32xf32>
    %169 = arith.mulf %164, %168 : vector<8x32xf32>
    %170 = tpu.concatenate %169, %147 in 1 : vector<8x32xf32>, vector<8x32xf32> -> vector<8x64xf32>
    %171 = arith.truncf %170 : vector<8x64xf32> to vector<8x64xbf16>
    %cst_47 = arith.constant dense<0.000000e+00> : vector<8x128xf32>
    %172 = tpu.matmul %171, %4, %cst_47 {dimension_numbers = #tpu.dot_dimension_numbers<[1], [0], [0], [1], [0, 0, 1, 1], [], []>} : vector<8x64xbf16>, vector<64x128xbf16>, vector<8x128xf32> -> vector<8x128xf32>
    %173 = arith.addf %172, %7 : vector<8x128xf32>
    %174 = vector.extract_strided_slice %173 {offsets = [0, 0], sizes = [8, 96], strides = [1, 1]} : vector<8x128xf32> to vector<8x96xf32>
    %175 = arith.negf %174 : vector<8x96xf32>
    %176 = math.exp %175 : vector<8x96xf32>
    %cst_48 = arith.constant 1.000000e+00 : f32
    %177 = vector.broadcast %cst_48 : f32 to vector<8x96xf32>
    %178 = arith.addf %177, %176 : vector<8x96xf32>
    %179 = arith.divf %177, %178 : vector<8x96xf32>
    %180 = vector.extract_strided_slice %173 {offsets = [0, 96], sizes = [8, 32], strides = [1, 1]} : vector<8x128xf32> to vector<8x32xf32>
    %181 = math.tanh %180 : vector<8x32xf32>
    %182 = vector.extract_strided_slice %179 {offsets = [0, 0], sizes = [8, 32], strides = [1, 1]} : vector<8x96xf32> to vector<8x32xf32>
    %183 = vector.extract_strided_slice %179 {offsets = [0, 32], sizes = [8, 32], strides = [1, 1]} : vector<8x96xf32> to vector<8x32xf32>
    %184 = vector.extract_strided_slice %179 {offsets = [0, 64], sizes = [8, 32], strides = [1, 1]} : vector<8x96xf32> to vector<8x32xf32>
    %185 = arith.mulf %183, %145 : vector<8x32xf32>
    %186 = arith.mulf %182, %181 : vector<8x32xf32>
    %187 = arith.addf %185, %186 : vector<8x32xf32>
    %188 = math.tanh %187 : vector<8x32xf32>
    %189 = arith.mulf %184, %188 : vector<8x32xf32>
    %c4_i32 = arith.constant 4 : i32
    %190 = arith.index_cast %c4_i32 : i32 to index
    %c0_49 = arith.constant 0 : index
    %c0_50 = arith.constant 0 : index
    %191 = vector.load %arg8[%190, %c0_49, %c0_50] : memref<8x8x128xf32, #tpu.memory_space<vmem>>, vector<1x8x128xf32>
    %192 = vector.shape_cast %191 : vector<1x8x128xf32> to vector<8x128xf32>
    %193 = arith.truncf %169 : vector<8x32xf32> to vector<8x32xbf16>
    %cst_51 = arith.constant dense<0.000000e+00> : vector<8x128xf32>
    %194 = tpu.matmul %193, %3, %cst_51 {dimension_numbers = #tpu.dot_dimension_numbers<[1], [0], [0], [1], [0, 0, 1, 1], [], []>} : vector<8x32xbf16>, vector<32x128xbf16>, vector<8x128xf32> -> vector<8x128xf32>
    %195 = arith.addf %192, %194 : vector<8x128xf32>
    %196 = vector.extract_strided_slice %195 {offsets = [0, 0], sizes = [8, 96], strides = [1, 1]} : vector<8x128xf32> to vector<8x96xf32>
    %197 = arith.negf %196 : vector<8x96xf32>
    %198 = math.exp %197 : vector<8x96xf32>
    %cst_52 = arith.constant 1.000000e+00 : f32
    %199 = vector.broadcast %cst_52 : f32 to vector<8x96xf32>
    %200 = arith.addf %199, %198 : vector<8x96xf32>
    %201 = arith.divf %199, %200 : vector<8x96xf32>
    %202 = vector.extract_strided_slice %195 {offsets = [0, 96], sizes = [8, 32], strides = [1, 1]} : vector<8x128xf32> to vector<8x32xf32>
    %203 = math.tanh %202 : vector<8x32xf32>
    %204 = vector.extract_strided_slice %201 {offsets = [0, 0], sizes = [8, 32], strides = [1, 1]} : vector<8x96xf32> to vector<8x32xf32>
    %205 = vector.extract_strided_slice %201 {offsets = [0, 32], sizes = [8, 32], strides = [1, 1]} : vector<8x96xf32> to vector<8x32xf32>
    %206 = vector.extract_strided_slice %201 {offsets = [0, 64], sizes = [8, 32], strides = [1, 1]} : vector<8x96xf32> to vector<8x32xf32>
    %207 = arith.mulf %205, %167 : vector<8x32xf32>
    %208 = arith.mulf %204, %203 : vector<8x32xf32>
    %209 = arith.addf %207, %208 : vector<8x32xf32>
    %210 = math.tanh %209 : vector<8x32xf32>
    %211 = arith.mulf %206, %210 : vector<8x32xf32>
    %212 = tpu.concatenate %211, %189 in 1 : vector<8x32xf32>, vector<8x32xf32> -> vector<8x64xf32>
    %213 = arith.truncf %212 : vector<8x64xf32> to vector<8x64xbf16>
    %cst_53 = arith.constant dense<0.000000e+00> : vector<8x128xf32>
    %214 = tpu.matmul %213, %4, %cst_53 {dimension_numbers = #tpu.dot_dimension_numbers<[1], [0], [0], [1], [0, 0, 1, 1], [], []>} : vector<8x64xbf16>, vector<64x128xbf16>, vector<8x128xf32> -> vector<8x128xf32>
    %215 = arith.addf %214, %7 : vector<8x128xf32>
    %216 = vector.extract_strided_slice %215 {offsets = [0, 0], sizes = [8, 96], strides = [1, 1]} : vector<8x128xf32> to vector<8x96xf32>
    %217 = arith.negf %216 : vector<8x96xf32>
    %218 = math.exp %217 : vector<8x96xf32>
    %cst_54 = arith.constant 1.000000e+00 : f32
    %219 = vector.broadcast %cst_54 : f32 to vector<8x96xf32>
    %220 = arith.addf %219, %218 : vector<8x96xf32>
    %221 = arith.divf %219, %220 : vector<8x96xf32>
    %222 = vector.extract_strided_slice %215 {offsets = [0, 96], sizes = [8, 32], strides = [1, 1]} : vector<8x128xf32> to vector<8x32xf32>
    %223 = math.tanh %222 : vector<8x32xf32>
    %224 = vector.extract_strided_slice %221 {offsets = [0, 0], sizes = [8, 32], strides = [1, 1]} : vector<8x96xf32> to vector<8x32xf32>
    %225 = vector.extract_strided_slice %221 {offsets = [0, 32], sizes = [8, 32], strides = [1, 1]} : vector<8x96xf32> to vector<8x32xf32>
    %226 = vector.extract_strided_slice %221 {offsets = [0, 64], sizes = [8, 32], strides = [1, 1]} : vector<8x96xf32> to vector<8x32xf32>
    %227 = arith.mulf %225, %187 : vector<8x32xf32>
    %228 = arith.mulf %224, %223 : vector<8x32xf32>
    %229 = arith.addf %227, %228 : vector<8x32xf32>
    %230 = math.tanh %229 : vector<8x32xf32>
    %231 = arith.mulf %226, %230 : vector<8x32xf32>
    %c5_i32 = arith.constant 5 : i32
    %232 = arith.index_cast %c5_i32 : i32 to index
    %c0_55 = arith.constant 0 : index
    %c0_56 = arith.constant 0 : index
    %233 = vector.load %arg8[%232, %c0_55, %c0_56] : memref<8x8x128xf32, #tpu.memory_space<vmem>>, vector<1x8x128xf32>
    %234 = vector.shape_cast %233 : vector<1x8x128xf32> to vector<8x128xf32>
    %235 = arith.truncf %211 : vector<8x32xf32> to vector<8x32xbf16>
    %cst_57 = arith.constant dense<0.000000e+00> : vector<8x128xf32>
    %236 = tpu.matmul %235, %3, %cst_57 {dimension_numbers = #tpu.dot_dimension_numbers<[1], [0], [0], [1], [0, 0, 1, 1], [], []>} : vector<8x32xbf16>, vector<32x128xbf16>, vector<8x128xf32> -> vector<8x128xf32>
    %237 = arith.addf %234, %236 : vector<8x128xf32>
    %238 = vector.extract_strided_slice %237 {offsets = [0, 0], sizes = [8, 96], strides = [1, 1]} : vector<8x128xf32> to vector<8x96xf32>
    %239 = arith.negf %238 : vector<8x96xf32>
    %240 = math.exp %239 : vector<8x96xf32>
    %cst_58 = arith.constant 1.000000e+00 : f32
    %241 = vector.broadcast %cst_58 : f32 to vector<8x96xf32>
    %242 = arith.addf %241, %240 : vector<8x96xf32>
    %243 = arith.divf %241, %242 : vector<8x96xf32>
    %244 = vector.extract_strided_slice %237 {offsets = [0, 96], sizes = [8, 32], strides = [1, 1]} : vector<8x128xf32> to vector<8x32xf32>
    %245 = math.tanh %244 : vector<8x32xf32>
    %246 = vector.extract_strided_slice %243 {offsets = [0, 0], sizes = [8, 32], strides = [1, 1]} : vector<8x96xf32> to vector<8x32xf32>
    %247 = vector.extract_strided_slice %243 {offsets = [0, 32], sizes = [8, 32], strides = [1, 1]} : vector<8x96xf32> to vector<8x32xf32>
    %248 = vector.extract_strided_slice %243 {offsets = [0, 64], sizes = [8, 32], strides = [1, 1]} : vector<8x96xf32> to vector<8x32xf32>
    %249 = arith.mulf %247, %209 : vector<8x32xf32>
    %250 = arith.mulf %246, %245 : vector<8x32xf32>
    %251 = arith.addf %249, %250 : vector<8x32xf32>
    %252 = math.tanh %251 : vector<8x32xf32>
    %253 = arith.mulf %248, %252 : vector<8x32xf32>
    %254 = tpu.concatenate %253, %231 in 1 : vector<8x32xf32>, vector<8x32xf32> -> vector<8x64xf32>
    %255 = arith.truncf %254 : vector<8x64xf32> to vector<8x64xbf16>
    %cst_59 = arith.constant dense<0.000000e+00> : vector<8x128xf32>
    %256 = tpu.matmul %255, %4, %cst_59 {dimension_numbers = #tpu.dot_dimension_numbers<[1], [0], [0], [1], [0, 0, 1, 1], [], []>} : vector<8x64xbf16>, vector<64x128xbf16>, vector<8x128xf32> -> vector<8x128xf32>
    %257 = arith.addf %256, %7 : vector<8x128xf32>
    %258 = vector.extract_strided_slice %257 {offsets = [0, 0], sizes = [8, 96], strides = [1, 1]} : vector<8x128xf32> to vector<8x96xf32>
    %259 = arith.negf %258 : vector<8x96xf32>
    %260 = math.exp %259 : vector<8x96xf32>
    %cst_60 = arith.constant 1.000000e+00 : f32
    %261 = vector.broadcast %cst_60 : f32 to vector<8x96xf32>
    %262 = arith.addf %261, %260 : vector<8x96xf32>
    %263 = arith.divf %261, %262 : vector<8x96xf32>
    %264 = vector.extract_strided_slice %257 {offsets = [0, 96], sizes = [8, 32], strides = [1, 1]} : vector<8x128xf32> to vector<8x32xf32>
    %265 = math.tanh %264 : vector<8x32xf32>
    %266 = vector.extract_strided_slice %263 {offsets = [0, 0], sizes = [8, 32], strides = [1, 1]} : vector<8x96xf32> to vector<8x32xf32>
    %267 = vector.extract_strided_slice %263 {offsets = [0, 32], sizes = [8, 32], strides = [1, 1]} : vector<8x96xf32> to vector<8x32xf32>
    %268 = vector.extract_strided_slice %263 {offsets = [0, 64], sizes = [8, 32], strides = [1, 1]} : vector<8x96xf32> to vector<8x32xf32>
    %269 = arith.mulf %267, %229 : vector<8x32xf32>
    %270 = arith.mulf %266, %265 : vector<8x32xf32>
    %271 = arith.addf %269, %270 : vector<8x32xf32>
    %272 = math.tanh %271 : vector<8x32xf32>
    %273 = arith.mulf %268, %272 : vector<8x32xf32>
    %c6_i32 = arith.constant 6 : i32
    %274 = arith.index_cast %c6_i32 : i32 to index
    %c0_61 = arith.constant 0 : index
    %c0_62 = arith.constant 0 : index
    %275 = vector.load %arg8[%274, %c0_61, %c0_62] : memref<8x8x128xf32, #tpu.memory_space<vmem>>, vector<1x8x128xf32>
    %276 = vector.shape_cast %275 : vector<1x8x128xf32> to vector<8x128xf32>
    %277 = arith.truncf %253 : vector<8x32xf32> to vector<8x32xbf16>
    %cst_63 = arith.constant dense<0.000000e+00> : vector<8x128xf32>
    %278 = tpu.matmul %277, %3, %cst_63 {dimension_numbers = #tpu.dot_dimension_numbers<[1], [0], [0], [1], [0, 0, 1, 1], [], []>} : vector<8x32xbf16>, vector<32x128xbf16>, vector<8x128xf32> -> vector<8x128xf32>
    %279 = arith.addf %276, %278 : vector<8x128xf32>
    %280 = vector.extract_strided_slice %279 {offsets = [0, 0], sizes = [8, 96], strides = [1, 1]} : vector<8x128xf32> to vector<8x96xf32>
    %281 = arith.negf %280 : vector<8x96xf32>
    %282 = math.exp %281 : vector<8x96xf32>
    %cst_64 = arith.constant 1.000000e+00 : f32
    %283 = vector.broadcast %cst_64 : f32 to vector<8x96xf32>
    %284 = arith.addf %283, %282 : vector<8x96xf32>
    %285 = arith.divf %283, %284 : vector<8x96xf32>
    %286 = vector.extract_strided_slice %279 {offsets = [0, 96], sizes = [8, 32], strides = [1, 1]} : vector<8x128xf32> to vector<8x32xf32>
    %287 = math.tanh %286 : vector<8x32xf32>
    %288 = vector.extract_strided_slice %285 {offsets = [0, 0], sizes = [8, 32], strides = [1, 1]} : vector<8x96xf32> to vector<8x32xf32>
    %289 = vector.extract_strided_slice %285 {offsets = [0, 32], sizes = [8, 32], strides = [1, 1]} : vector<8x96xf32> to vector<8x32xf32>
    %290 = vector.extract_strided_slice %285 {offsets = [0, 64], sizes = [8, 32], strides = [1, 1]} : vector<8x96xf32> to vector<8x32xf32>
    %291 = arith.mulf %289, %251 : vector<8x32xf32>
    %292 = arith.mulf %288, %287 : vector<8x32xf32>
    %293 = arith.addf %291, %292 : vector<8x32xf32>
    %294 = math.tanh %293 : vector<8x32xf32>
    %295 = arith.mulf %290, %294 : vector<8x32xf32>
    %296 = tpu.concatenate %295, %273 in 1 : vector<8x32xf32>, vector<8x32xf32> -> vector<8x64xf32>
    %297 = arith.truncf %296 : vector<8x64xf32> to vector<8x64xbf16>
    %cst_65 = arith.constant dense<0.000000e+00> : vector<8x128xf32>
    %298 = tpu.matmul %297, %4, %cst_65 {dimension_numbers = #tpu.dot_dimension_numbers<[1], [0], [0], [1], [0, 0, 1, 1], [], []>} : vector<8x64xbf16>, vector<64x128xbf16>, vector<8x128xf32> -> vector<8x128xf32>
    %299 = arith.addf %298, %7 : vector<8x128xf32>
    %300 = vector.extract_strided_slice %299 {offsets = [0, 0], sizes = [8, 96], strides = [1, 1]} : vector<8x128xf32> to vector<8x96xf32>
    %301 = arith.negf %300 : vector<8x96xf32>
    %302 = math.exp %301 : vector<8x96xf32>
    %cst_66 = arith.constant 1.000000e+00 : f32
    %303 = vector.broadcast %cst_66 : f32 to vector<8x96xf32>
    %304 = arith.addf %303, %302 : vector<8x96xf32>
    %305 = arith.divf %303, %304 : vector<8x96xf32>
    %306 = vector.extract_strided_slice %299 {offsets = [0, 96], sizes = [8, 32], strides = [1, 1]} : vector<8x128xf32> to vector<8x32xf32>
    %307 = math.tanh %306 : vector<8x32xf32>
    %308 = vector.extract_strided_slice %305 {offsets = [0, 0], sizes = [8, 32], strides = [1, 1]} : vector<8x96xf32> to vector<8x32xf32>
    %309 = vector.extract_strided_slice %305 {offsets = [0, 32], sizes = [8, 32], strides = [1, 1]} : vector<8x96xf32> to vector<8x32xf32>
    %310 = vector.extract_strided_slice %305 {offsets = [0, 64], sizes = [8, 32], strides = [1, 1]} : vector<8x96xf32> to vector<8x32xf32>
    %311 = arith.mulf %309, %271 : vector<8x32xf32>
    %312 = arith.mulf %308, %307 : vector<8x32xf32>
    %313 = arith.addf %311, %312 : vector<8x32xf32>
    %314 = math.tanh %313 : vector<8x32xf32>
    %315 = arith.mulf %310, %314 : vector<8x32xf32>
    %c7_i32 = arith.constant 7 : i32
    %316 = arith.index_cast %c7_i32 : i32 to index
    %c0_67 = arith.constant 0 : index
    %c0_68 = arith.constant 0 : index
    %317 = vector.load %arg8[%316, %c0_67, %c0_68] : memref<8x8x128xf32, #tpu.memory_space<vmem>>, vector<1x8x128xf32>
    %318 = vector.shape_cast %317 : vector<1x8x128xf32> to vector<8x128xf32>
    %319 = arith.truncf %295 : vector<8x32xf32> to vector<8x32xbf16>
    %cst_69 = arith.constant dense<0.000000e+00> : vector<8x128xf32>
    %320 = tpu.matmul %319, %3, %cst_69 {dimension_numbers = #tpu.dot_dimension_numbers<[1], [0], [0], [1], [0, 0, 1, 1], [], []>} : vector<8x32xbf16>, vector<32x128xbf16>, vector<8x128xf32> -> vector<8x128xf32>
    %321 = arith.addf %318, %320 : vector<8x128xf32>
    %322 = vector.extract_strided_slice %321 {offsets = [0, 0], sizes = [8, 96], strides = [1, 1]} : vector<8x128xf32> to vector<8x96xf32>
    %323 = arith.negf %322 : vector<8x96xf32>
    %324 = math.exp %323 : vector<8x96xf32>
    %cst_70 = arith.constant 1.000000e+00 : f32
    %325 = vector.broadcast %cst_70 : f32 to vector<8x96xf32>
    %326 = arith.addf %325, %324 : vector<8x96xf32>
    %327 = arith.divf %325, %326 : vector<8x96xf32>
    %328 = vector.extract_strided_slice %321 {offsets = [0, 96], sizes = [8, 32], strides = [1, 1]} : vector<8x128xf32> to vector<8x32xf32>
    %329 = math.tanh %328 : vector<8x32xf32>
    %330 = vector.extract_strided_slice %327 {offsets = [0, 0], sizes = [8, 32], strides = [1, 1]} : vector<8x96xf32> to vector<8x32xf32>
    %331 = vector.extract_strided_slice %327 {offsets = [0, 32], sizes = [8, 32], strides = [1, 1]} : vector<8x96xf32> to vector<8x32xf32>
    %332 = vector.extract_strided_slice %327 {offsets = [0, 64], sizes = [8, 32], strides = [1, 1]} : vector<8x96xf32> to vector<8x32xf32>
    %333 = arith.mulf %331, %293 : vector<8x32xf32>
    %334 = arith.mulf %330, %329 : vector<8x32xf32>
    %335 = arith.addf %333, %334 : vector<8x32xf32>
    %336 = math.tanh %335 : vector<8x32xf32>
    %337 = arith.mulf %332, %336 : vector<8x32xf32>
    %338 = tpu.concatenate %337, %315 in 1 : vector<8x32xf32>, vector<8x32xf32> -> vector<8x64xf32>
    %339 = arith.truncf %338 : vector<8x64xf32> to vector<8x64xbf16>
    %cst_71 = arith.constant dense<0.000000e+00> : vector<8x128xf32>
    %340 = tpu.matmul %339, %4, %cst_71 {dimension_numbers = #tpu.dot_dimension_numbers<[1], [0], [0], [1], [0, 0, 1, 1], [], []>} : vector<8x64xbf16>, vector<64x128xbf16>, vector<8x128xf32> -> vector<8x128xf32>
    %341 = arith.addf %340, %7 : vector<8x128xf32>
    %342 = vector.extract_strided_slice %341 {offsets = [0, 0], sizes = [8, 96], strides = [1, 1]} : vector<8x128xf32> to vector<8x96xf32>
    %343 = arith.negf %342 : vector<8x96xf32>
    %344 = math.exp %343 : vector<8x96xf32>
    %cst_72 = arith.constant 1.000000e+00 : f32
    %345 = vector.broadcast %cst_72 : f32 to vector<8x96xf32>
    %346 = arith.addf %345, %344 : vector<8x96xf32>
    %347 = arith.divf %345, %346 : vector<8x96xf32>
    %348 = vector.extract_strided_slice %341 {offsets = [0, 96], sizes = [8, 32], strides = [1, 1]} : vector<8x128xf32> to vector<8x32xf32>
    %349 = math.tanh %348 : vector<8x32xf32>
    %350 = vector.extract_strided_slice %347 {offsets = [0, 0], sizes = [8, 32], strides = [1, 1]} : vector<8x96xf32> to vector<8x32xf32>
    %351 = vector.extract_strided_slice %347 {offsets = [0, 32], sizes = [8, 32], strides = [1, 1]} : vector<8x96xf32> to vector<8x32xf32>
    %352 = vector.extract_strided_slice %347 {offsets = [0, 64], sizes = [8, 32], strides = [1, 1]} : vector<8x96xf32> to vector<8x32xf32>
    %353 = arith.mulf %351, %313 : vector<8x32xf32>
    %354 = arith.mulf %350, %349 : vector<8x32xf32>
    %355 = arith.addf %353, %354 : vector<8x32xf32>
    %356 = math.tanh %355 : vector<8x32xf32>
    %357 = arith.mulf %352, %356 : vector<8x32xf32>
    %c8_i32 = arith.constant 8 : i32
    %c0_73 = arith.constant 0 : index
    %c0_74 = arith.constant 0 : index
    %358 = vector.load %arg9[%c0_73, %c0_74] : memref<8x32xf32, #tpu.memory_space<vmem>>, vector<8x32xf32>
    tpu.vector_store %arg9[%c0_73, %c0_74], %337 {strides = array<i32>} : memref<8x32xf32, #tpu.memory_space<vmem>>, vector<8x32xf32>,
    %c0_75 = arith.constant 0 : index
    %c0_76 = arith.constant 0 : index
    %359 = vector.load %arg10[%c0_75, %c0_76] : memref<8x32xf32, #tpu.memory_space<vmem>>, vector<8x32xf32>
    tpu.vector_store %arg10[%c0_75, %c0_76], %335 {strides = array<i32>} : memref<8x32xf32, #tpu.memory_space<vmem>>, vector<8x32xf32>,
    %c0_77 = arith.constant 0 : index
    %c0_78 = arith.constant 0 : index
    %360 = vector.load %arg11[%c0_77, %c0_78] : memref<8x32xf32, #tpu.memory_space<vmem>>, vector<8x32xf32>
    tpu.vector_store %arg11[%c0_77, %c0_78], %357 {strides = array<i32>} : memref<8x32xf32, #tpu.memory_space<vmem>>, vector<8x32xf32>,
    %c0_79 = arith.constant 0 : index
    %c0_80 = arith.constant 0 : index
    %361 = vector.load %arg12[%c0_79, %c0_80] : memref<8x32xf32, #tpu.memory_space<vmem>>, vector<8x32xf32>
    tpu.vector_store %arg12[%c0_79, %c0_80], %355 {strides = array<i32>} : memref<8x32xf32, #tpu.memory_space<vmem>>, vector<8x32xf32>,
    %c0_i32_81 = arith.constant 0 : i32
    %362 = arith.cmpi eq, %arg0, %c0_i32_81 : i32
    %363 = arith.extui %362 : i1 to i32
    %c0_i32_82 = arith.constant 0 : i32
    %364 = arith.cmpi ne, %363, %c0_i32_82 : i32
    scf.if %364 {
      %c0_83 = arith.constant 0 : index
      %c0_84 = arith.constant 0 : index
      %365 = vector.load %arg7[%c0_83, %c0_84] : memref<8x32xf32, #tpu.memory_space<vmem>>, vector<8x32xf32>
      tpu.vector_store %arg7[%c0_83, %c0_84], %357 {strides = array<i32>} : memref<8x32xf32, #tpu.memory_space<vmem>>, vector<8x32xf32>,
    } else {
    }
    return
  }
  func.func @transform_0(%arg0: i32) -> (i32, i32, i32) {
    %c0_i32 = arith.constant 0 : i32
    %c0_i32_0 = arith.constant 0 : i32
    %c0_i32_1 = arith.constant 0 : i32
    return %arg0, %c0_i32, %c0_i32_0 : i32, i32, i32
  }
  func.func @transform_1(%arg0: i32) -> (i32, i32) {
    %c0_i32 = arith.constant 0 : i32
    %c0_i32_0 = arith.constant 0 : i32
    %c0_i32_1 = arith.constant 0 : i32
    return %c0_i32, %c0_i32_0 : i32, i32
  }
  func.func @transform_2(%arg0: i32) -> (i32, i32) {
    %c0_i32 = arith.constant 0 : i32
    %c0_i32_0 = arith.constant 0 : i32
    %c0_i32_1 = arith.constant 0 : i32
    return %c0_i32, %c0_i32_0 : i32, i32
  }
  func.func @transform_3(%arg0: i32) -> (i32, i32) {
    %c0_i32 = arith.constant 0 : i32
    %c0_i32_0 = arith.constant 0 : i32
    %c0_i32_1 = arith.constant 0 : i32
    return %c0_i32, %c0_i32_0 : i32, i32
  }
  func.func @transform_4(%arg0: i32) -> (i32, i32) {
    %c0_i32 = arith.constant 0 : i32
    %c0_i32_0 = arith.constant 0 : i32
    %c0_i32_1 = arith.constant 0 : i32
    return %c0_i32, %c0_i32_0 : i32, i32
  }
  func.func @transform_5(%arg0: i32) -> (i32, i32) {
    %c0_i32 = arith.constant 0 : i32
    %c0_i32_0 = arith.constant 0 : i32
    %c0_i32_1 = arith.constant 0 : i32
    return %c0_i32, %c0_i32_0 : i32, i32
  }
  func.func @transform_6(%arg0: i32) -> (i32, i32) {
    %c0_i32 = arith.constant 0 : i32
    %c0_i32_0 = arith.constant 0 : i32
    %c0_i32_1 = arith.constant 0 : i32
    return %c0_i32, %c0_i32_0 : i32, i32
  }
}

</mosaic_0001>

<bundles_post_ra>
// kernel: tpu_custom_call.1
= control target key start
LH: loop header
LB: loop body
LE: loop exit
PB: predicated region body
PF: predicated region fallthrough
CT: control target
= control target key end

     0   :  { %11 = vsyncpa [#allocation8], 0  ;;  %s1973_s0 = inlined_call_operand.hbm [shape: bf16[8,8,16], index: 0, kind: input, shape index: {}]   ;;  %s1974_s1 = inlined_call_operand.hbm [shape: bf16[16,128], index: 1, kind: input, shape index: {}]   ;;  %s1975_s2 = inlined_call_operand.hbm [shape: bf16[32,128], index: 2, kind: input, shape index: {}]   ;;  %s1976_s3 = inlined_call_operand.vmem [shape: f32[1,128], index: 3, kind: input, shape index: {}]   ;;  %s1977_s4 = inlined_call_operand.hbm [shape: bf16[64,128], index: 4, kind: input, shape index: {}]   ;;  %s1978_s5 = inlined_call_operand.vmem [shape: f32[1,128], index: 5, kind: input, shape index: {}]   ;;  %s1979_s6 = inlined_call_operand.hbm [shape: f32[8,32], index: 6, kind: output, shape index: {}]  }
   0x1   :  { %12 = vsyncpa [#allocation11], 0 }
   0x2   :  { %13 = vsyncpa [#allocation14], 0 }
   0x3   :  { %14 = vsyncpa [#allocation9], 0  ;;  %s32_s23 = sshll.u32 %s1974_s1, 4  ;;  %s1641_s24 = smov [#allocation10]   ;;  %s33_s23 = int_to_ptr.hbm [resolvable:$true] %s32_s23 }
   0x4   :  { %s34_s25 = sshll.u32 %s1641_s24, 4  ;;  %s19_s28 = sshll.u32 %s1973_s0, 4  ;;  %s35_s25 = int_to_ptr.vmem [resolvable:$true] %s34_s25  ;;  %s20_s28 = int_to_ptr.hbm [resolvable:$true] %s19_s28 }
   0x5   :  { %s1642_s29 = smov 64   ;;  %s1643_s30 = smov 4  }
   0x6   :  { %40 = dma.hbm_to_vmem [thread:$0]  %s33_s23, 128, %s35_s25, [#allocation11], %s1642_s29, %s1642_s29, %s1643_s30  }
   0x7   :  { %s1644_s7 = smov [#allocation7]   ;;  %s45_s1 = sshll.u32 %s1975_s2, 4  ;;  %s46_s1 = int_to_ptr.hbm [resolvable:$true] %s45_s1 }
   0x8   :  { %s21_s8 = sshll.u32 %s1644_s7, 4  ;;  %s60_s0 = sshll.u32 %s1977_s4, 4  ;;  %s22_s8 = int_to_ptr.vmem [resolvable:$true] %s21_s8  ;;  %s61_s0 = int_to_ptr.hbm [resolvable:$true] %s60_s0 }
   0x9   :  { %27 = dma.hbm_to_vmem [thread:$0]  %s20_s28, 512, %s22_s8, [#allocation8], %s1642_s29, %s1642_s29, %s1643_s30  }
   0xa   :  { %s1645_s13 = smov [#allocation12]   ;;  %s1646_s15 = smov [#allocation13]  }
   0xb   :  { %s47_s14 = sshll.u32 %s1645_s13, 4  ;;  %s62_s16 = sshll.u32 %s1646_s15, 4  ;;  %s48_s14 = int_to_ptr.vmem [resolvable:$true] %s47_s14  ;;  %s63_s16 = int_to_ptr.vmem [resolvable:$true] %s62_s16 }
   0xc   :  { %53 = dma.hbm_to_vmem [thread:$0]  %s46_s1, 256, %s48_s14, [#allocation11], %s1642_s29, %s1642_s29, %s1643_s30  }
   0xd   :  { %68 = dma.hbm_to_vmem [thread:$0]  %s61_s0, 512, %s63_s16, [#allocation14], %s1642_s29, %s1642_s29, %s1643_s30  }
   0xe   :  { %1633 = dma.done.wait [#allocation8], 512  }
   0xf   :  { %1634 = vsyncadd [#allocation8], 4294966784 }
  0x10   :  { %1635 = dma.done.wait [#allocation11], 384  }
  0x11   :  { %1636 = vsyncadd [#allocation11], 4294966912 }
  0x12   :  { %1637 = dma.done.wait [#allocation14], 512  }
  0x13   :  { %1638 = vsyncadd [#allocation14], 4294966784  ;;  %vm92_vm0 = vcmask 261120   ;;  %v1647_v0 = vmov 0.0   ;;  %v1370_v1 = vld [vmem:[#allocation10] sm:$0xff]  ;;  %v1710_v2 = vld [vmem:[#allocation12 + $0x8] sm:$0xff] }
  0x14   :  { %93 = vst.msk [vmem:[#allocation3] sm:$0xff] %vm92_vm0, %v1647_v0  ;;  %v1366_v3 = vld [vmem:[#allocation7] sm:$0xff]  ;;  %169 = vmatpush.bf16.msra.mxu0 %v1370_v1  ;;  %239 = vmatpush.bf16.msra.mxu1 %v1710_v2  ;;  %vm149_vm1 = vcmask 130048   ;;  %v1713_v4 = vld [vmem:[#allocation12] sm:$0xff]  ;;  %s1648_s17 = smov 32   ;;  %v1738_v36 = vld [vmem:[#allocation13 + $0x18] sm:$0xff] }
  0x15   :  { %94 = vst.msk [vmem:[#allocation4] sm:$0xff] %vm92_vm0, %v1647_v0  ;;  %395 = vmatpush.bf16.msra.mxu3 %v1710_v2  ;;  %v1727_v7 = vld [vmem:[%s1976_s3] ss:$0 sm:$0xff]  ;;  %330 = vmatpush.bf16.msra.mxu2 %v1738_v36  ;;  %v1744_v40 = vld [vmem:[#allocation13 + $0x10] sm:$0xff]  ;;  %v1752_v42 = vld [vmem:[#allocation13] sm:$0xff]  ;;  %vm322_vm6 = vcmask 523264  }
  0x16   :  { %95 = vst.msk [vmem:[#allocation5] sm:$0xff] %vm92_vm0, %v1647_v0  ;;  %v1747_v41 = vld [vmem:[#allocation13 + $0x8] sm:$0xff]  ;;  %s1649_s20 = smov 96   ;;  %s1268_s27 = sshll.u32 %s1979_s6, 4  ;;  %s1269_s27 = int_to_ptr.hbm [resolvable:$true] %s1268_s27 }
  0x17   :  { %96 = vst.msk [vmem:[#allocation6] sm:$0xff] %vm92_vm0, %v1647_v0  ;;  %1300 = vmatmul.msk.bf16.vlgmr.msra.gmra.mxu0 %vm149_vm1, %v1366_v3  ;;  %v1775_v53 = vld [vmem:[%s1978_s5] ss:$0 sm:$0xff] }
  0x18   :  { %1010 = vmatpush.bf16.msrb.mxu0 %v1710_v2  ;;  %240 = vmatpush.bf16.msra.mxu1 %v1713_v4 }
  0x19   :  { %396 = vmatpush.bf16.msra.mxu3 %v1713_v4  ;;  %331 = vmatpush.bf16.msra.mxu2 %v1744_v40 }
  0x1b   :  { %v211_v5 = vld [vmem:[#allocation3] sm:$0xff] }
  0x1c   :  { %v216_v6 = vpack.c.bf16 %v211_v5, %v211_v5  ;;  %1011 = vmatpush.bf16.msrb.mxu0 %v1713_v4  ;;  %v212_v14 = vld [vmem:[#allocation4] sm:$0xff]  ;;  %457 = vmatpush.bf16.msrb.mxu1 %v1738_v36 }
  0x1d   :  { %518 = vmatpush.bf16.msrb.mxu3 %v1710_v2  ;;  %v213_v30 = vld [vmem:[#allocation5] sm:$0xff]  ;;  %332 = vmatpush.bf16.msra.mxu2 %v1747_v41 }
  0x1e   :  { %1312 = vmatmul.msk.bf16.vlgmr.msra.gmra.mxu1 %vm92_vm0, %v216_v6  ;;  %v214_v57 = vld [vmem:[#allocation6] sm:$0xff] }
  0x20   :  { %458 = vmatpush.bf16.msrb.mxu1 %v1744_v40 }
  0x21   :  { %519 = vmatpush.bf16.msrb.mxu3 %v1713_v4  ;;  %333 = vmatpush.bf16.msra.mxu2 %v1752_v42 }
  0x24   :  { %459 = vmatpush.bf16.msrb.mxu1 %v1747_v41 }
  0x25   :  { %580 = vmatpush.bf16.msrb.mxu2 %v1738_v36 }
  0x28   :  { %460 = vmatpush.bf16.msrb.mxu1 %v1752_v42 }
  0x29   :  { %581 = vmatpush.bf16.msrb.mxu2 %v1744_v40 }
  0x2c   :  { %641 = vmatpush.bf16.msra.mxu1 %v1710_v2 }
  0x2d   :  { %582 = vmatpush.bf16.msrb.mxu2 %v1747_v41 }
  0x30   :  { %642 = vmatpush.bf16.msra.mxu1 %v1713_v4 }
  0x31   :  { %583 = vmatpush.bf16.msrb.mxu2 %v1752_v42 }
  0x94   :  { %v171_v8 = vpop.f32.mrf.mxu0 }
  0x95   :  { %v195_v9 = vadd.f32 %v1727_v7, %v171_v8 }
  0x9b   :  { %v242_v10 = vpop.f32.mrf.mxu1 }
  0x9c   :  { %v246_v11 = vadd.f32 %v242_v10, %v195_v9  ;;  %v173_v48 = vpop.f32.mrf.mxu0 }
  0x9d   :  { %v196_v49 = vadd.f32 %v1727_v7, %v173_v48 }
  0x9e   :  { %1383 = vtanh.f32 %v246_v11  ;;  %v1313_v15 = vmul.f32 -1.442695, %v246_v11 }
  0xa0   :  { %1385 = vpow2.f32 %v1313_v15 }
  0xa3   :  { %v244_v12 = vpop.f32.mrf.mxu1 }
  0xa4   :  { %v1384_v13 = vpop.eup %1383 }
  0xa5   :  { %273 = vrot.lane.b32.xlu0 %v1384_v13, %s1648_s17 }
  0xa6   :  { %v1386_v16 = vpop.eup %1385 }
  0xa7   :  { %v250_v17 = vadd.f32 1.0, %v1386_v16 }
  0xa9   :  { %1387 = vrcp.f32 %v250_v17  ;;  %v262_v23 = vand.u32 2147483648, %v250_v17  ;;  %vm256_vm3 = vweird.f32 %v250_v17  ;;  %v260_v24 = vand.u32 2147483647, %v250_v17 }
  0xab   :  { %v263_v26 = vor.u32 1.1754944e-38, %v262_v23  ;;  %vm261_vm5 = vcmp.eq.f32.partialorder %v260_v24, 8.507059e+37 }
  0xad   :  { %268 = vrot.lane.b32.xlu0 %v212_v14, %s1648_s17 }
  0xaf   :  { %v1388_v18 = vpop.eup %1387 }
  0xb0   :  { %v252_v19 = vmul.f32 %v1388_v18, %v250_v17  ;;  %vm257_vm2 = vweird.f32 %v1388_v18 }
  0xb1   :  { %vm258_vm4 = vmor %vm256_vm3, %vm257_vm2 }
  0xb2   :  { %v253_v20 = vsub.f32 1.0, %v252_v19 }
  0xb4   :  { %v254_v21 = vmul.f32 %v1388_v18, %v253_v20 }
  0xb5   :  { %293 = vrot.lane.b32.xlu0 %v213_v30, %s1648_s17 }
  0xb6   :  { %v255_v22 = vadd.f32 %v1388_v18, %v254_v21 }
  0xb8   :  { %v259_v25 = vsel %vm258_vm4, %v1388_v18, %v255_v22 }
  0xb9   :  { %v264_v28 = vsel %vm261_vm5, %v263_v26, %v259_v25 }
 0x117   :  { %v274_v27 = vpop.permute.xlu0 %273 }
 0x118   :  { %v276_v29 = vmul.f32 %v274_v27, %v264_v28 }
 0x11a   :  { %278 = vrot.lane.b32.xlu1 %v276_v29, %s1648_s17 }
 0x11f   :  { %v269_v31 = vpop.permute.xlu0 %268 }
 0x120   :  { %v271_v32 = vmul.f32 %v269_v31, %v264_v28 }
 0x127   :  { %v294_v44 = vpop.permute.xlu0 %293 }
 0x18c   :  { %v279_v33 = vpop.permute.xlu1 %278 }
 0x18d   :  { %v1734_v34 = vadd.f32 %v279_v33, %v271_v32 }
 0x18f   :  { %1389 = vtanh.f32 %v1734_v34 }
 0x195   :  { %v1390_v35 = vpop.eup %1389 }
 0x196   :  { %284 = vrot.lane.b32.xlu1 %v1390_v35, %s1648_s17 }
 0x208   :  { %v285_v37 = vpop.permute.xlu1 %284 }
 0x209   :  { %v287_v38 = vmul.f32 %v285_v37, %v264_v28 }
 0x20b   :  { %v382_v39 = vpack.c.bf16 %v287_v38, %v287_v38 }
 0x20d   :  { %384 = vrot.lane.b32.xlu2 %v382_v39, %s1642_s29 }
 0x215   :  { %289 = vrot.lane.b32.xlu2 %v287_v38, %s1642_s29 }
 0x267   :  { %v385_v43 = vpop.permute.xlu2 %384 }
 0x268   :  { %1332 = vmatmul.msk.bf16.vlgmr.msra.gmra.mxu3 %vm92_vm0, %v385_v43 }
 0x269   :  { %703 = vmatpush.bf16.msra.mxu3 %v1738_v36 }
 0x26d   :  { %704 = vmatpush.bf16.msra.mxu3 %v1744_v40 }
 0x26f   :  { %v290_v45 = vpop.permute.xlu2 %289 }
 0x270   :  { %v296_v46 = vsel %vm92_vm0, %v290_v45, %v294_v44 }
 0x271   :  { %v297_v47 = vpack.c.bf16 %v296_v46, %v296_v46  ;;  %705 = vmatpush.bf16.msra.mxu3 %v1747_v41 }
 0x273   :  { %1330 = vmatmul.msk.bf16.vlgmr.msra.gmra.mxu2 %vm322_vm6, %v297_v47 }
 0x274   :  { %764 = vmatpush.bf16.msra.mxu2 %v1710_v2 }
 0x275   :  { %706 = vmatpush.bf16.msra.mxu3 %v1752_v42 }
 0x278   :  { %765 = vmatpush.bf16.msra.mxu2 %v1713_v4 }
 0x2eb   :  { %v398_v50 = vpop.f32.mrf.mxu3 }
 0x2ec   :  { %v402_v51 = vadd.f32 %v398_v50, %v196_v49 }
 0x2ee   :  { %1391 = vtanh.f32 %v402_v51  ;;  %v1333_v62 = vmul.f32 -1.442695, %v402_v51 }
 0x2f3   :  { %v400_v52 = vpop.f32.mrf.mxu3 }
 0x2f4   :  { %v1392_v54 = vpop.eup %1391 }
 0x2f5   :  { %425 = vrot.lane.b32.xlu1 %v1392_v54, %s1648_s17 }
 0x2f6   :  { %v335_v55 = vpop.f32.mrf.mxu2 }
 0x2f7   :  { %v336_v56 = vadd.f32 %v1775_v53, %v335_v55 }
 0x2f9   :  { %1393 = vtanh.f32 %v336_v56  ;;  %v1331_v60 = vmul.f32 -1.442695, %v336_v56 }
 0x2fb   :  { %1395 = vpow2.f32 %v1331_v60 }
 0x2fc   :  { %1397 = vpow2.f32 %v1333_v62 }
 0x2fd   :  { %360 = vrot.lane.b32.xlu1 %v214_v57, %s1648_s17 }
 0x2fe   :  { %v337_v58 = vpop.f32.mrf.mxu2 }
 0x2ff   :  { %v1394_v59 = vpop.eup %1393 }
 0x300   :  { %365 = vrot.lane.b32.xlu2 %v1394_v59, %s1648_s17 }
 0x301   :  { %v1396_v61 = vpop.eup %1395 }
 0x302   :  { %v342_v63 = vadd.f32 1.0, %v1396_v61  ;;  %v1398_v0 = vpop.eup %1397 }
 0x303   :  { %v406_v3 = vadd.f32 1.0, %v1398_v0 }
 0x304   :  { %1399 = vrcp.f32 %v342_v63  ;;  %v354_v12 = vand.u32 2147483648, %v342_v63  ;;  %vm348_vm8 = vweird.f32 %v342_v63  ;;  %v352_v13 = vand.u32 2147483647, %v342_v63 }
 0x305   :  { %1401 = vrcp.f32 %v406_v3  ;;  %v418_v22 = vand.u32 2147483648, %v406_v3  ;;  %vm412_vm12 = vweird.f32 %v406_v3  ;;  %v416_v23 = vand.u32 2147483647, %v406_v3 }
 0x306   :  { %v355_v16 = vor.u32 1.1754944e-38, %v354_v12  ;;  %vm353_vm10 = vcmp.eq.f32.partialorder %v352_v13, 8.507059e+37 }
 0x307   :  { %v419_v25 = vor.u32 1.1754944e-38, %v418_v22  ;;  %vm417_vm14 = vcmp.eq.f32.partialorder %v416_v23, 8.507059e+37 }
 0x30a   :  { %v1400_v1 = vpop.eup %1399 }
 0x30b   :  { %v344_v5 = vmul.f32 %v1400_v1, %v342_v63  ;;  %v1402_v9 = vpop.eup %1401  ;;  %vm349_vm7 = vweird.f32 %v1400_v1 }
 0x30c   :  { %v408_v11 = vmul.f32 %v1402_v9, %v406_v3  ;;  %vm350_vm9 = vmor %vm348_vm8, %vm349_vm7  ;;  %vm413_vm11 = vweird.f32 %v1402_v9 }
 0x30d   :  { %v345_v6 = vsub.f32 1.0, %v344_v5  ;;  %vm414_vm13 = vmor %vm412_vm12, %vm413_vm11 }
 0x30e   :  { %v409_v15 = vsub.f32 1.0, %v408_v11 }
 0x30f   :  { %v346_v8 = vmul.f32 %v1400_v1, %v345_v6 }
 0x310   :  { %v410_v20 = vmul.f32 %v1402_v9, %v409_v15 }
 0x311   :  { %v347_v10 = vadd.f32 %v1400_v1, %v346_v8 }
 0x312   :  { %v411_v21 = vadd.f32 %v1402_v9, %v410_v20 }
 0x313   :  { %v351_v14 = vsel %vm350_vm9, %v1400_v1, %v347_v10 }
 0x314   :  { %v356_v18 = vsel %vm353_vm10, %v355_v16, %v351_v14  ;;  %v415_v24 = vsel %vm414_vm13, %v1402_v9, %v411_v21 }
 0x315   :  { %v420_v27 = vsel %vm417_vm14, %v419_v25, %v415_v24 }
 0x316   :  { %v423_v35 = vmul.f32 %v420_v27, %v1734_v34  ;;  %v1367_v34 = vld [vmem:[#allocation7 + $0x8] sm:$0xff] }
 0x317   :  { %1301 = vmatmul.msk.bf16.gmra.mxu0 %vm149_vm1, %v1367_v34 }
 0x35a   :  { %v366_v17 = vpop.permute.xlu2 %365 }
 0x35b   :  { %v368_v19 = vmul.f32 %v366_v17, %v356_v18 }
 0x35d   :  { %370 = vrot.lane.b32.xlu2 %v368_v19, %s1648_s17 }
 0x367   :  { %v426_v26 = vpop.permute.xlu1 %425 }
 0x368   :  { %v428_v28 = vmul.f32 %v426_v26, %v420_v27 }
 0x36a   :  { %430 = vrot.lane.b32.xlu0 %v428_v28, %s1648_s17 }
 0x36f   :  { %v361_v29 = vpop.permute.xlu1 %360 }
 0x370   :  { %v363_v30 = vmul.f32 %v361_v29, %v356_v18 }
 0x394   :  { %v176_v54 = vpop.f32.mrf.mxu0 }
 0x395   :  { %v197_v55 = vadd.f32 %v1727_v7, %v176_v54 }
 0x3b7   :  { %v371_v31 = vpop.permute.xlu2 %370 }
 0x3b8   :  { %v1783_v32 = vadd.f32 %v371_v31, %v363_v30 }
 0x3ba   :  { %1403 = vtanh.f32 %v1783_v32 }
 0x3c0   :  { %v1404_v33 = vpop.eup %1403 }
 0x3c1   :  { %376 = vrot.lane.b32.xlu1 %v1404_v33, %s1648_s17 }
 0x3dc   :  { %v431_v37 = vpop.permute.xlu0 %430 }
 0x3dd   :  { %v1788_v38 = vadd.f32 %v431_v37, %v423_v35 }
 0x3df   :  { %1405 = vtanh.f32 %v1788_v38 }
 0x3e5   :  { %v1406_v39 = vpop.eup %1405 }
 0x3e6   :  { %436 = vrot.lane.b32.xlu0 %v1406_v39, %s1648_s17 }
 0x433   :  { %v377_v43 = vpop.permute.xlu1 %376 }
 0x434   :  { %v379_v44 = vmul.f32 %v377_v43, %v356_v18 }
 0x436   :  { %445 = vrot.lane.b32.xlu1 %v379_v44, %s1649_s20 }
 0x458   :  { %v437_v45 = vpop.permute.xlu0 %436 }
 0x459   :  { %v439_v46 = vmul.f32 %v437_v45, %v420_v27 }
 0x45b   :  { %441 = vrot.lane.b32.xlu0 %v439_v46, %s1642_s29  ;;  %v505_v47 = vpack.c.bf16 %v439_v46, %v439_v46 }
 0x45d   :  { %507 = vrot.lane.b32.xlu2 %v505_v47, %s1642_s29 }
 0x4a8   :  { %v446_v49 = vpop.permute.xlu1 %445 }
 0x4b7   :  { %v508_v48 = vpop.permute.xlu2 %507 }
 0x4b8   :  { %1336 = vmatmul.msk.bf16.vlgmr.msrb.gmra.mxu3 %vm92_vm0, %v508_v48 }
 0x4b9   :  { %887 = vmatpush.bf16.msrb.mxu3 %v1710_v2 }
 0x4bd   :  { %888 = vmatpush.bf16.msrb.mxu3 %v1713_v4 }
 0x4cd   :  { %v442_v50 = vpop.permute.xlu0 %441 }
 0x4ce   :  { %v448_v51 = vsel %vm92_vm0, %v442_v50, %v446_v49 }
 0x4cf   :  { %v449_v52 = vpack.c.bf16 %v448_v51, %v448_v51 }
 0x4d1   :  { %1334 = vmatmul.msk.bf16.vlgmr.msrb.gmra.mxu1 %vm322_vm6, %v449_v52 }
 0x4d2   :  { %826 = vmatpush.bf16.msrb.mxu1 %v1738_v36 }
 0x4d6   :  { %827 = vmatpush.bf16.msrb.mxu1 %v1744_v40 }
 0x4da   :  { %828 = vmatpush.bf16.msrb.mxu1 %v1747_v41 }
 0x4de   :  { %829 = vmatpush.bf16.msrb.mxu1 %v1752_v42 }
 0x53b   :  { %v521_v56 = vpop.f32.mrf.mxu3 }
 0x53c   :  { %v525_v57 = vadd.f32 %v521_v56, %v197_v55  ;;  %v178_v56 = vpop.f32.mrf.mxu0 }
 0x53e   :  { %1407 = vtanh.f32 %v525_v57  ;;  %v1337_v1 = vmul.f32 -1.442695, %v525_v57  ;;  %v198_v57 = vadd.f32 %v1727_v7, %v178_v56 }
 0x543   :  { %v523_v58 = vpop.f32.mrf.mxu3 }
 0x544   :  { %v1408_v59 = vpop.eup %1407 }
 0x545   :  { %548 = vrot.lane.b32.xlu0 %v1408_v59, %s1648_s17 }
 0x54e   :  { %v462_v60 = vpop.f32.mrf.mxu1 }
 0x54f   :  { %v463_v61 = vadd.f32 %v1775_v53, %v462_v60 }
 0x551   :  { %1409 = vtanh.f32 %v463_v61  ;;  %v1335_v0 = vmul.f32 -1.442695, %v463_v61 }
 0x553   :  { %1411 = vpow2.f32 %v1335_v0 }
 0x554   :  { %1413 = vpow2.f32 %v1337_v1 }
 0x556   :  { %v464_v62 = vpop.f32.mrf.mxu1 }
 0x557   :  { %v1410_v63 = vpop.eup %1409 }
 0x558   :  { %488 = vrot.lane.b32.xlu2 %v1410_v63, %s1648_s17 }
 0x559   :  { %v1412_v3 = vpop.eup %1411 }
 0x55a   :  { %v469_v5 = vadd.f32 1.0, %v1412_v3  ;;  %v1414_v6 = vpop.eup %1413 }
 0x55b   :  { %v529_v8 = vadd.f32 1.0, %v1414_v6 }
 0x55c   :  { %1415 = vrcp.f32 %v469_v5  ;;  %v481_v17 = vand.u32 2147483648, %v469_v5  ;;  %vm475_vm2 = vweird.f32 %v469_v5  ;;  %v479_v19 = vand.u32 2147483647, %v469_v5 }
 0x55d   :  { %1417 = vrcp.f32 %v529_v8  ;;  %v541_v23 = vand.u32 2147483648, %v529_v8  ;;  %vm535_vm7 = vweird.f32 %v529_v8  ;;  %v539_v26 = vand.u32 2147483647, %v529_v8 }
 0x55e   :  { %v482_v21 = vor.u32 1.1754944e-38, %v481_v17  ;;  %vm480_vm5 = vcmp.eq.f32.partialorder %v479_v19, 8.507059e+37 }
 0x55f   :  { %v542_v29 = vor.u32 1.1754944e-38, %v541_v23  ;;  %vm540_vm9 = vcmp.eq.f32.partialorder %v539_v26, 8.507059e+37 }
 0x562   :  { %v1416_v9 = vpop.eup %1415 }
 0x563   :  { %v471_v10 = vmul.f32 %v1416_v9, %v469_v5  ;;  %v1418_v11 = vpop.eup %1417  ;;  %vm476_vm15 = vweird.f32 %v1416_v9 }
 0x564   :  { %v531_v13 = vmul.f32 %v1418_v11, %v529_v8  ;;  %vm477_vm3 = vmor %vm475_vm2, %vm476_vm15  ;;  %vm536_vm4 = vweird.f32 %v1418_v11 }
 0x565   :  { %v472_v12 = vsub.f32 1.0, %v471_v10  ;;  %vm537_vm8 = vmor %vm535_vm7, %vm536_vm4 }
 0x566   :  { %v532_v15 = vsub.f32 1.0, %v531_v13 }
 0x567   :  { %v473_v14 = vmul.f32 %v1416_v9, %v472_v12 }
 0x568   :  { %v533_v18 = vmul.f32 %v1418_v11, %v532_v15 }
 0x569   :  { %v474_v16 = vadd.f32 %v1416_v9, %v473_v14 }
 0x56a   :  { %v534_v22 = vadd.f32 %v1418_v11, %v533_v18 }
 0x56b   :  { %v478_v20 = vsel %vm477_vm3, %v1416_v9, %v474_v16 }
 0x56c   :  { %v483_v25 = vsel %vm480_vm5, %v482_v21, %v478_v20  ;;  %v538_v28 = vsel %vm537_vm8, %v1418_v11, %v534_v22 }
 0x56d   :  { %v543_v31 = vsel %vm540_vm9, %v542_v29, %v538_v28  ;;  %v486_v44 = vmul.f32 %v483_v25, %v1783_v32 }
 0x56e   :  { %v546_v35 = vmul.f32 %v543_v31, %v1788_v38 }
 0x5b2   :  { %v489_v24 = vpop.permute.xlu2 %488 }
 0x5b3   :  { %v491_v27 = vmul.f32 %v489_v24, %v483_v25 }
 0x5b5   :  { %493 = vrot.lane.b32.xlu1 %v491_v27, %s1648_s17 }
 0x5b7   :  { %v549_v30 = vpop.permute.xlu0 %548 }
 0x5b8   :  { %v551_v33 = vmul.f32 %v549_v30, %v543_v31 }
 0x5ba   :  { %553 = vrot.lane.b32.xlu2 %v551_v33, %s1648_s17 }
 0x614   :  { %v554_v37 = vpop.permute.xlu2 %553 }
 0x615   :  { %v1812_v39 = vadd.f32 %v554_v37, %v546_v35 }
 0x617   :  { %1419 = vtanh.f32 %v1812_v39 }
 0x61d   :  { %v1420_v43 = vpop.eup %1419 }
 0x61e   :  { %559 = vrot.lane.b32.xlu1 %v1420_v43, %s1648_s17 }
 0x627   :  { %v494_v45 = vpop.permute.xlu1 %493 }
 0x628   :  { %v1817_v46 = vadd.f32 %v494_v45, %v486_v44 }
 0x62a   :  { %1421 = vtanh.f32 %v1817_v46 }
 0x630   :  { %v1422_v47 = vpop.eup %1421 }
 0x631   :  { %499 = vrot.lane.b32.xlu0 %v1422_v47, %s1648_s17 }
 0x690   :  { %v560_v34 = vpop.permute.xlu1 %559 }
 0x691   :  { %v562_v38 = vmul.f32 %v560_v34, %v543_v31 }
 0x693   :  { %564 = vrot.lane.b32.xlu2 %v562_v38, %s1642_s29  ;;  %v628_v48 = vpack.c.bf16 %v562_v38, %v562_v38 }
 0x695   :  { %630 = vrot.lane.b32.xlu1 %v628_v48, %s1642_s29 }
 0x6a3   :  { %v500_v49 = vpop.permute.xlu0 %499 }
 0x6a4   :  { %v502_v50 = vmul.f32 %v500_v49, %v483_v25 }
 0x6a6   :  { %568 = vrot.lane.b32.xlu0 %v502_v50, %s1649_s20 }
 0x6ed   :  { %v565_v51 = vpop.permute.xlu2 %564 }
 0x707   :  { %v631_v32 = vpop.permute.xlu1 %630 }
 0x708   :  { %1340 = vmatmul.msk.bf16.vlgmr.msra.gmra.mxu1 %vm92_vm0, %v631_v32 }
 0x709   :  { %1072 = vmatpush.bf16.msra.mxu1 %v1738_v36 }
 0x70d   :  { %1073 = vmatpush.bf16.msra.mxu1 %v1744_v40 }
 0x711   :  { %1074 = vmatpush.bf16.msra.mxu1 %v1747_v41 }
 0x715   :  { %1075 = vmatpush.bf16.msra.mxu1 %v1752_v42 }
 0x718   :  { %v569_v52 = vpop.permute.xlu0 %568 }
 0x719   :  { %v571_v54 = vsel %vm92_vm0, %v565_v51, %v569_v52 }
 0x71a   :  { %v572_v55 = vpack.c.bf16 %v571_v54, %v571_v54 }
 0x71c   :  { %1338 = vmatmul.msk.bf16.vlgmr.msrb.gmra.mxu2 %vm322_vm6, %v572_v55 }
 0x71d   :  { %949 = vmatpush.bf16.msrb.mxu2 %v1738_v36 }
 0x721   :  { %950 = vmatpush.bf16.msrb.mxu2 %v1744_v40 }
 0x725   :  { %951 = vmatpush.bf16.msrb.mxu2 %v1747_v41 }
 0x729   :  { %952 = vmatpush.bf16.msrb.mxu2 %v1752_v42 }
 0x785   :  { %v644_v58 = vpop.f32.mrf.mxu1 }
 0x786   :  { %v648_v59 = vadd.f32 %v644_v58, %v198_v57 }
 0x788   :  { %1423 = vtanh.f32 %v648_v59  ;;  %v1341_v3 = vmul.f32 -1.442695, %v648_v59 }
 0x78d   :  { %v646_v60 = vpop.f32.mrf.mxu1 }
 0x78e   :  { %v1424_v61 = vpop.eup %1423 }
 0x78f   :  { %671 = vrot.lane.b32.xlu2 %v1424_v61, %s1648_s17 }
 0x79f   :  { %v585_v62 = vpop.f32.mrf.mxu2 }
 0x7a0   :  { %v586_v63 = vadd.f32 %v1775_v53, %v585_v62 }
 0x7a2   :  { %1425 = vtanh.f32 %v586_v63  ;;  %v1339_v20 = vmul.f32 -1.442695, %v586_v63 }
 0x7a3   :  { %1427 = vpow2.f32 %v1341_v3 }
 0x7a7   :  { %v587_v0 = vpop.f32.mrf.mxu2 }
 0x7a8   :  { %v1426_v1 = vpop.eup %1425 }
 0x7a9   :  { %611 = vrot.lane.b32.xlu0 %v1426_v1, %s1648_s17  ;;  %v1428_v5 = vpop.eup %1427 }
 0x7aa   :  { %v652_v6 = vadd.f32 1.0, %v1428_v5 }
 0x7ac   :  { %1429 = vrcp.f32 %v652_v6  ;;  %v664_v13 = vand.u32 2147483648, %v652_v6  ;;  %vm658_vm11 = vweird.f32 %v652_v6  ;;  %v662_v14 = vand.u32 2147483647, %v652_v6 }
 0x7ad   :  { %1431 = vpow2.f32 %v1339_v20 }
 0x7ae   :  { %v665_v16 = vor.u32 1.1754944e-38, %v664_v13  ;;  %vm663_vm13 = vcmp.eq.f32.partialorder %v662_v14, 8.507059e+37 }
 0x7b2   :  { %v1430_v8 = vpop.eup %1429 }
 0x7b3   :  { %v654_v9 = vmul.f32 %v1430_v8, %v652_v6  ;;  %vm659_vm10 = vweird.f32 %v1430_v8  ;;  %v1432_v21 = vpop.eup %1431 }
 0x7b4   :  { %vm660_vm12 = vmor %vm658_vm11, %vm659_vm10  ;;  %v592_v22 = vadd.f32 1.0, %v1432_v21 }
 0x7b5   :  { %v655_v10 = vsub.f32 1.0, %v654_v9 }
 0x7b6   :  { %1433 = vrcp.f32 %v592_v22  ;;  %v604_v28 = vand.u32 2147483648, %v592_v22  ;;  %vm598_vm15 = vweird.f32 %v592_v22  ;;  %v602_v29 = vand.u32 2147483647, %v592_v22 }
 0x7b7   :  { %v656_v11 = vmul.f32 %v1430_v8, %v655_v10 }
 0x7b8   :  { %v605_v31 = vor.u32 1.1754944e-38, %v604_v28  ;;  %vm603_vm3 = vcmp.eq.f32.partialorder %v602_v29, 8.507059e+37 }
 0x7b9   :  { %v657_v12 = vadd.f32 %v1430_v8, %v656_v11 }
 0x7bb   :  { %v661_v15 = vsel %vm660_vm12, %v1430_v8, %v657_v12 }
 0x7bc   :  { %v666_v18 = vsel %vm663_vm13, %v665_v16, %v661_v15  ;;  %v1434_v23 = vpop.eup %1433 }
 0x7bd   :  { %v594_v24 = vmul.f32 %v1434_v23, %v592_v22  ;;  %vm599_vm14 = vweird.f32 %v1434_v23  ;;  %v669_v43 = vmul.f32 %v666_v18, %v1812_v39 }
 0x7be   :  { %vm600_vm2 = vmor %vm598_vm15, %vm599_vm14 }
 0x7bf   :  { %v595_v25 = vsub.f32 1.0, %v594_v24 }
 0x7c1   :  { %v596_v26 = vmul.f32 %v1434_v23, %v595_v25 }
 0x7c3   :  { %v597_v27 = vadd.f32 %v1434_v23, %v596_v26 }
 0x7c5   :  { %v601_v30 = vsel %vm600_vm2, %v1434_v23, %v597_v27 }
 0x7c6   :  { %v606_v35 = vsel %vm603_vm3, %v605_v31, %v601_v30 }
 0x7c7   :  { %v609_v34 = vmul.f32 %v606_v35, %v1817_v46  ;;  %v1368_v46 = vld [vmem:[#allocation7 + $0x10] sm:$0xff] }
 0x7c8   :  { %1302 = vmatmul.msk.bf16.gmra.mxu0 %vm149_vm1, %v1368_v46 }
 0x7e9   :  { %v672_v17 = vpop.permute.xlu2 %671 }
 0x7ea   :  { %v674_v19 = vmul.f32 %v672_v17, %v666_v18 }
 0x7ec   :  { %676 = vrot.lane.b32.xlu1 %v674_v19, %s1648_s17 }
 0x81b   :  { %v612_v33 = vpop.permute.xlu0 %611 }
 0x81c   :  { %v614_v37 = vmul.f32 %v612_v33, %v606_v35 }
 0x81e   :  { %616 = vrot.lane.b32.xlu2 %v614_v37, %s1648_s17 }
 0x845   :  { %v181_v59 = vpop.f32.mrf.mxu0 }
 0x85e   :  { %v677_v44 = vpop.permute.xlu1 %676 }
 0x85f   :  { %v1842_v45 = vadd.f32 %v677_v44, %v669_v43 }
 0x861   :  { %1435 = vtanh.f32 %v1842_v45 }
 0x867   :  { %v1436_v47 = vpop.eup %1435 }
 0x868   :  { %682 = vrot.lane.b32.xlu0 %v1436_v47, %s1648_s17 }
 0x878   :  { %v617_v38 = vpop.permute.xlu2 %616 }
 0x879   :  { %v1847_v48 = vadd.f32 %v617_v38, %v609_v34 }
 0x87b   :  { %1437 = vtanh.f32 %v1847_v48 }
 0x881   :  { %v1438_v49 = vpop.eup %1437 }
 0x882   :  { %622 = vrot.lane.b32.xlu1 %v1438_v49, %s1648_s17 }
 0x8da   :  { %v683_v50 = vpop.permute.xlu0 %682 }
 0x8db   :  { %v685_v39 = vmul.f32 %v683_v50, %v666_v18 }
 0x8dd   :  { %687 = vrot.lane.b32.xlu0 %v685_v39, %s1642_s29  ;;  %v751_v32 = vpack.c.bf16 %v685_v39, %v685_v39 }
 0x8df   :  { %753 = vrot.lane.b32.xlu2 %v751_v32, %s1642_s29 }
 0x8f4   :  { %v623_v51 = vpop.permute.xlu1 %622 }
 0x8f5   :  { %v625_v52 = vmul.f32 %v623_v51, %v606_v35 }
 0x8f7   :  { %691 = vrot.lane.b32.xlu1 %v625_v52, %s1649_s20 }
 0x939   :  { %v754_v54 = vpop.permute.xlu2 %753 }
 0x93a   :  { %1344 = vmatmul.msk.bf16.vlgmr.msra.gmra.mxu2 %vm92_vm0, %v754_v54 }
 0x93b   :  { %1195 = vmatpush.bf16.msra.mxu2 %v1738_v36  ;;  %v199_v36 = vadd.f32 %v1727_v7, %v181_v59 }
 0x93f   :  { %1196 = vmatpush.bf16.msra.mxu2 %v1744_v40 }
 0x943   :  { %1197 = vmatpush.bf16.msra.mxu2 %v1747_v41 }
 0x947   :  { %1198 = vmatpush.bf16.msra.mxu2 %v1752_v42 }
 0x94f   :  { %v688_v55 = vpop.permute.xlu0 %687 }
 0x969   :  { %v692_v56 = vpop.permute.xlu1 %691 }
 0x96a   :  { %v694_v57 = vsel %vm92_vm0, %v688_v55, %v692_v56  ;;  %v183_v55 = vpop.f32.mrf.mxu0 }
 0x96b   :  { %v695_v58 = vpack.c.bf16 %v694_v57, %v694_v57  ;;  %v200_v56 = vadd.f32 %v1727_v7, %v183_v55 }
 0x96d   :  { %1342 = vmatmul.msk.bf16.vlgmr.msra.gmra.mxu3 %vm322_vm6, %v695_v58 }
 0x96e   :  { %1133 = vmatpush.bf16.msra.mxu3 %v1710_v2 }
 0x972   :  { %1134 = vmatpush.bf16.msra.mxu3 %v1713_v4 }
 0x9bd   :  { %v767_v60 = vpop.f32.mrf.mxu2 }
 0x9be   :  { %v771_v40 = vadd.f32 %v767_v60, %v199_v36 }
 0x9c0   :  { %1439 = vtanh.f32 %v771_v40  ;;  %v1345_v63 = vmul.f32 -1.442695, %v771_v40 }
 0x9c5   :  { %v769_v41 = vpop.f32.mrf.mxu2 }
 0x9c6   :  { %v1440_v61 = vpop.eup %1439 }
 0x9c7   :  { %794 = vrot.lane.b32.xlu2 %v1440_v61, %s1648_s17 }
 0x9f0   :  { %v708_v42 = vpop.f32.mrf.mxu3 }
 0x9f1   :  { %v709_v62 = vadd.f32 %v1775_v53, %v708_v42 }
 0x9f3   :  { %1441 = vtanh.f32 %v709_v62  ;;  %v1343_v17 = vmul.f32 -1.442695, %v709_v62 }
 0x9f4   :  { %1443 = vpow2.f32 %v1345_v63 }
 0x9f8   :  { %v710_v0 = vpop.f32.mrf.mxu3 }
 0x9f9   :  { %v1442_v2 = vpop.eup %1441 }
 0x9fa   :  { %734 = vrot.lane.b32.xlu0 %v1442_v2, %s1648_s17  ;;  %v1444_v4 = vpop.eup %1443 }
 0x9fb   :  { %v775_v1 = vadd.f32 1.0, %v1444_v4 }
 0x9fd   :  { %1445 = vrcp.f32 %v775_v1  ;;  %v787_v10 = vand.u32 2147483648, %v775_v1  ;;  %vm781_vm5 = vweird.f32 %v775_v1  ;;  %v785_v11 = vand.u32 2147483647, %v775_v1 }
 0x9fe   :  { %1447 = vpow2.f32 %v1343_v17 }
 0x9ff   :  { %v788_v13 = vor.u32 1.1754944e-38, %v787_v10  ;;  %vm786_vm8 = vcmp.eq.f32.partialorder %v785_v11, 8.507059e+37 }
 0xa03   :  { %v1446_v3 = vpop.eup %1445 }
 0xa04   :  { %v777_v5 = vmul.f32 %v1446_v3, %v775_v1  ;;  %vm782_vm4 = vweird.f32 %v1446_v3  ;;  %v1448_v18 = vpop.eup %1447 }
 0xa05   :  { %vm783_vm7 = vmor %vm781_vm5, %vm782_vm4  ;;  %v715_v19 = vadd.f32 1.0, %v1448_v18 }
 0xa06   :  { %v778_v6 = vsub.f32 1.0, %v777_v5 }
 0xa07   :  { %1449 = vrcp.f32 %v715_v19  ;;  %v727_v25 = vand.u32 2147483648, %v715_v19  ;;  %vm721_vm10 = vweird.f32 %v715_v19  ;;  %v725_v26 = vand.u32 2147483647, %v715_v19 }
 0xa08   :  { %v779_v8 = vmul.f32 %v1446_v3, %v778_v6 }
 0xa09   :  { %v728_v28 = vor.u32 1.1754944e-38, %v727_v25  ;;  %vm726_vm12 = vcmp.eq.f32.partialorder %v725_v26, 8.507059e+37 }
 0xa0a   :  { %v780_v9 = vadd.f32 %v1446_v3, %v779_v8 }
 0xa0c   :  { %v784_v12 = vsel %vm783_vm7, %v1446_v3, %v780_v9 }
 0xa0d   :  { %v789_v15 = vsel %vm786_vm8, %v788_v13, %v784_v12  ;;  %v1450_v20 = vpop.eup %1449 }
 0xa0e   :  { %v717_v21 = vmul.f32 %v1450_v20, %v715_v19  ;;  %vm722_vm9 = vweird.f32 %v1450_v20  ;;  %v792_v33 = vmul.f32 %v789_v15, %v1842_v45 }
 0xa0f   :  { %vm723_vm11 = vmor %vm721_vm10, %vm722_vm9 }
 0xa10   :  { %v718_v22 = vsub.f32 1.0, %v717_v21 }
 0xa12   :  { %v719_v23 = vmul.f32 %v1450_v20, %v718_v22 }
 0xa14   :  { %v720_v24 = vadd.f32 %v1450_v20, %v719_v23 }
 0xa16   :  { %v724_v27 = vsel %vm723_vm11, %v1450_v20, %v720_v24 }
 0xa17   :  { %v729_v30 = vsel %vm726_vm12, %v728_v28, %v724_v27 }
 0xa18   :  { %v732_v44 = vmul.f32 %v729_v30, %v1847_v48 }
 0xa21   :  { %v795_v14 = vpop.permute.xlu2 %794 }
 0xa22   :  { %v797_v16 = vmul.f32 %v795_v14, %v789_v15 }
 0xa24   :  { %799 = vrot.lane.b32.xlu1 %v797_v16, %s1648_s17 }
 0xa6c   :  { %v735_v29 = vpop.permute.xlu0 %734 }
 0xa6d   :  { %v737_v31 = vmul.f32 %v735_v29, %v729_v30 }
 0xa6f   :  { %739 = vrot.lane.b32.xlu2 %v737_v31, %s1648_s17 }
 0xa96   :  { %v800_v35 = vpop.permute.xlu1 %799 }
 0xa97   :  { %v1871_v37 = vadd.f32 %v800_v35, %v792_v33 }
 0xa99   :  { %1451 = vtanh.f32 %v1871_v37 }
 0xa9f   :  { %v1452_v43 = vpop.eup %1451 }
 0xaa0   :  { %805 = vrot.lane.b32.xlu0 %v1452_v43, %s1648_s17 }
 0xac9   :  { %v740_v47 = vpop.permute.xlu2 %739 }
 0xaca   :  { %v1876_v34 = vadd.f32 %v740_v47, %v732_v44 }
 0xacc   :  { %1453 = vtanh.f32 %v1876_v34 }
 0xad2   :  { %v1454_v38 = vpop.eup %1453 }
 0xad3   :  { %745 = vrot.lane.b32.xlu1 %v1454_v38, %s1648_s17  ;;  %v1369_v38 = vld [vmem:[#allocation7 + $0x18] sm:$0xff] }
 0xad4   :  { %1303 = vmatmul.msk.bf16.gmra.mxu0 %vm149_vm1, %v1369_v38 }
 0xb12   :  { %v806_v49 = vpop.permute.xlu0 %805 }
 0xb13   :  { %v808_v45 = vmul.f32 %v806_v49, %v789_v15 }
 0xb15   :  { %810 = vrot.lane.b32.xlu0 %v808_v45, %s1642_s29  ;;  %v874_v50 = vpack.c.bf16 %v808_v45, %v808_v45 }
 0xb17   :  { %876 = vrot.lane.b32.xlu2 %v874_v50, %s1642_s29 }
 0xb45   :  { %v746_v39 = vpop.permute.xlu1 %745 }
 0xb46   :  { %v748_v32 = vmul.f32 %v746_v39, %v729_v30 }
 0xb48   :  { %814 = vrot.lane.b32.xlu1 %v748_v32, %s1649_s20 }
 0xb71   :  { %v877_v48 = vpop.permute.xlu2 %876 }
 0xb72   :  { %1348 = vmatmul.msk.bf16.vlgmr.msrb.gmra.mxu3 %vm92_vm0, %v877_v48 }
 0xb87   :  { %v811_v51 = vpop.permute.xlu0 %810 }
 0xbba   :  { %v815_v52 = vpop.permute.xlu1 %814 }
 0xbbb   :  { %v817_v46 = vsel %vm92_vm0, %v811_v51, %v815_v52  ;;  %v186_v51 = vpop.f32.mrf.mxu0 }
 0xbbc   :  { %v818_v54 = vpack.c.bf16 %v817_v46, %v817_v46  ;;  %v1914_v46 = vld [vmem:[%s1976_s3] ss:$0 sm:$0xff] }
 0xbbe   :  { %1346 = vmatmul.msk.bf16.vlgmr.msrb.gmra.mxu1 %vm322_vm6, %v818_v54  ;;  %v201_v54 = vadd.f32 %v1914_v46, %v186_v51 }
 0xbc3   :  { %v1909_v52 = vpop.f32.mrf.mxu0 }
 0xbf5   :  { %v890_v57 = vpop.f32.mrf.mxu3 }
 0xbf6   :  { %v894_v58 = vadd.f32 %v890_v57, %v200_v56 }
 0xbf8   :  { %1455 = vtanh.f32 %v894_v58  ;;  %v1349_v42 = vmul.f32 -1.442695, %v894_v58 }
 0xbfd   :  { %v892_v59 = vpop.f32.mrf.mxu3 }
 0xbfe   :  { %v1456_v36 = vpop.eup %1455 }
 0xbff   :  { %917 = vrot.lane.b32.xlu0 %v1456_v36, %s1648_s17 }
 0xc3b   :  { %v831_v60 = vpop.f32.mrf.mxu1 }
 0xc3c   :  { %v832_v40 = vadd.f32 %v1775_v53, %v831_v60 }
 0xc3e   :  { %1457 = vtanh.f32 %v832_v40  ;;  %v1347_v11 = vmul.f32 -1.442695, %v832_v40 }
 0xc3f   :  { %1459 = vpow2.f32 %v1349_v42 }
 0xc43   :  { %v833_v41 = vpop.f32.mrf.mxu1 }
 0xc44   :  { %v1458_v61 = vpop.eup %1457 }
 0xc45   :  { %857 = vrot.lane.b32.xlu2 %v1458_v61, %s1648_s17  ;;  %v1460_v62 = vpop.eup %1459 }
 0xc46   :  { %v898_v63 = vadd.f32 1.0, %v1460_v62 }
 0xc48   :  { %1461 = vrcp.f32 %v898_v63  ;;  %v910_v3 = vand.u32 2147483648, %v898_v63  ;;  %vm904_vm14 = vweird.f32 %v898_v63  ;;  %v908_v5 = vand.u32 2147483647, %v898_v63 }
 0xc49   :  { %1463 = vpow2.f32 %v1347_v11 }
 0xc4a   :  { %v911_v8 = vor.u32 1.1754944e-38, %v910_v3  ;;  %vm909_vm2 = vcmp.eq.f32.partialorder %v908_v5, 8.507059e+37 }
 0xc4e   :  { %v1462_v7 = vpop.eup %1461 }
 0xc4f   :  { %v900_v0 = vmul.f32 %v1462_v7, %v898_v63  ;;  %vm905_vm13 = vweird.f32 %v1462_v7  ;;  %v1464_v13 = vpop.eup %1463 }
 0xc50   :  { %vm906_vm15 = vmor %vm904_vm14, %vm905_vm13  ;;  %v838_v14 = vadd.f32 1.0, %v1464_v13 }
 0xc51   :  { %v901_v2 = vsub.f32 1.0, %v900_v0 }
 0xc52   :  { %1465 = vrcp.f32 %v838_v14  ;;  %v850_v20 = vand.u32 2147483648, %v838_v14  ;;  %vm844_vm4 = vweird.f32 %v838_v14  ;;  %v848_v21 = vand.u32 2147483647, %v838_v14 }
 0xc53   :  { %v902_v4 = vmul.f32 %v1462_v7, %v901_v2 }
 0xc54   :  { %v851_v23 = vor.u32 1.1754944e-38, %v850_v20  ;;  %vm849_vm7 = vcmp.eq.f32.partialorder %v848_v21, 8.507059e+37 }
 0xc55   :  { %v903_v1 = vadd.f32 %v1462_v7, %v902_v4 }
 0xc57   :  { %v907_v6 = vsel %vm906_vm15, %v1462_v7, %v903_v1 }
 0xc58   :  { %v912_v10 = vsel %vm909_vm2, %v911_v8, %v907_v6  ;;  %v1466_v15 = vpop.eup %1465 }
 0xc59   :  { %v840_v16 = vmul.f32 %v1466_v15, %v838_v14  ;;  %vm845_vm3 = vweird.f32 %v1466_v15  ;;  %v915_v27 = vmul.f32 %v912_v10, %v1871_v37 }
 0xc5a   :  { %vm846_vm5 = vmor %vm844_vm4, %vm845_vm3 }
 0xc5b   :  { %v841_v17 = vsub.f32 1.0, %v840_v16 }
 0xc5d   :  { %v842_v18 = vmul.f32 %v1466_v15, %v841_v17 }
 0xc5f   :  { %v843_v19 = vadd.f32 %v1466_v15, %v842_v18 }
 0xc61   :  { %v847_v22 = vsel %vm846_vm5, %v1466_v15, %v843_v19 }
 0xc62   :  { %v852_v25 = vsel %vm849_vm7, %v851_v23, %v847_v22 }
 0xc63   :  { %v855_v31 = vmul.f32 %v852_v25, %v1876_v34 }
 0xc71   :  { %v918_v9 = vpop.permute.xlu0 %917 }
 0xc72   :  { %v920_v12 = vmul.f32 %v918_v9, %v912_v10 }
 0xc74   :  { %922 = vrot.lane.b32.xlu2 %v920_v12, %s1648_s17 }
 0xc9f   :  { %v858_v24 = vpop.permute.xlu2 %857 }
 0xca0   :  { %v860_v26 = vmul.f32 %v858_v24, %v852_v25 }
 0xca2   :  { %862 = vrot.lane.b32.xlu1 %v860_v26, %s1648_s17 }
 0xcce   :  { %v923_v28 = vpop.permute.xlu2 %922 }
 0xccf   :  { %v1893_v29 = vadd.f32 %v923_v28, %v915_v27 }
 0xcd1   :  { %1467 = vtanh.f32 %v1893_v29 }
 0xcd7   :  { %v1468_v30 = vpop.eup %1467 }
 0xcd8   :  { %928 = vrot.lane.b32.xlu1 %v1468_v30, %s1648_s17 }
 0xd14   :  { %v863_v33 = vpop.permute.xlu1 %862 }
 0xd15   :  { %v1898_v35 = vadd.f32 %v863_v33, %v855_v31 }
 0xd17   :  { %1469 = vtanh.f32 %v1898_v35 }
 0xd1d   :  { %v1470_v43 = vpop.eup %1469 }
 0xd1e   :  { %868 = vrot.lane.b32.xlu0 %v1470_v43, %s1648_s17 }
 0xd4a   :  { %v929_v44 = vpop.permute.xlu1 %928 }
 0xd4b   :  { %v931_v37 = vmul.f32 %v929_v44, %v912_v10 }
 0xd4d   :  { %933 = vrot.lane.b32.xlu2 %v931_v37, %s1642_s29  ;;  %v997_v47 = vpack.c.bf16 %v931_v37, %v931_v37 }
 0xd4f   :  { %999 = vrot.lane.b32.xlu1 %v997_v47, %s1642_s29 }
 0xd90   :  { %v869_v49 = vpop.permute.xlu0 %868 }
 0xd91   :  { %v871_v34 = vmul.f32 %v869_v49, %v852_v25 }
 0xd93   :  { %937 = vrot.lane.b32.xlu0 %v871_v34, %s1649_s20 }
 0xda7   :  { %v934_v50 = vpop.permute.xlu2 %933 }
 0xdc1   :  { %v1000_v45 = vpop.permute.xlu1 %999 }
 0xdc2   :  { %1352 = vmatmul.msk.bf16.vlgmr.msrb.gmra.mxu0 %vm92_vm0, %v1000_v45 }
 0xe05   :  { %v938_v39 = vpop.permute.xlu0 %937 }
 0xe06   :  { %v940_v32 = vsel %vm92_vm0, %v934_v50, %v938_v39  ;;  %v202_v50 = vadd.f32 %v1914_v46, %v1909_v52 }
 0xe07   :  { %v941_v48 = vpack.c.bf16 %v940_v32, %v940_v32 }
 0xe09   :  { %1350 = vmatmul.msk.bf16.vlgmr.msrb.gmra.mxu2 %vm322_vm6, %v941_v48 }
 0xe3f   :  { %v1013_v55 = vpop.f32.mrf.mxu0 }
 0xe40   :  { %v1017_v56 = vadd.f32 %v1013_v55, %v201_v54 }
 0xe42   :  { %1471 = vtanh.f32 %v1017_v56  ;;  %v1353_v59 = vmul.f32 -1.442695, %v1017_v56 }
 0xe44   :  { %1473 = vpow2.f32 %v1353_v59 }
 0xe47   :  { %v1015_v57 = vpop.f32.mrf.mxu0 }
 0xe48   :  { %v1472_v58 = vpop.eup %1471 }
 0xe49   :  { %1040 = vrot.lane.b32.xlu2 %v1472_v58, %s1648_s17  ;;  %v1944_v58 = vld [vmem:[%s1978_s5] ss:$0 sm:$0xff]  ;;  %s1650_s5 = smov [#allocation15]  }
 0xe4a   :  { %v1474_v36 = vpop.eup %1473  ;;  %s1266_s24 = sshll.u32 %s1650_s5, 4  ;;  %s1267_s24 = int_to_ptr.vmem [resolvable:$true] %s1266_s24 }
 0xe4b   :  { %v1021_v60 = vadd.f32 1.0, %v1474_v36 }
 0xe4d   :  { %1475 = vrcp.f32 %v1021_v60  ;;  %v1033_v4 = vand.u32 2147483648, %v1021_v60  ;;  %vm1027_vm8 = vweird.f32 %v1021_v60  ;;  %v1031_v1 = vand.u32 2147483647, %v1021_v60 }
 0xe4f   :  { %v1034_v5 = vor.u32 1.1754944e-38, %v1033_v4  ;;  %vm1032_vm10 = vcmp.eq.f32.partialorder %v1031_v1, 8.507059e+37 }
 0xe53   :  { %v1476_v41 = vpop.eup %1475 }
 0xe54   :  { %v1023_v42 = vmul.f32 %v1476_v41, %v1021_v60  ;;  %vm1028_vm1 = vweird.f32 %v1476_v41 }
 0xe55   :  { %vm1029_vm9 = vmor %vm1027_vm8, %vm1028_vm1 }
 0xe56   :  { %v1024_v63 = vsub.f32 1.0, %v1023_v42 }
 0xe58   :  { %v1025_v0 = vmul.f32 %v1476_v41, %v1024_v63 }
 0xe5a   :  { %v1026_v2 = vadd.f32 %v1476_v41, %v1025_v0 }
 0xe5c   :  { %v1030_v3 = vsel %vm1029_vm9, %v1476_v41, %v1026_v2 }
 0xe5d   :  { %v1035_v8 = vsel %vm1032_vm10, %v1034_v5, %v1030_v3 }
 0xe5e   :  { %v1038_v24 = vmul.f32 %v1035_v8, %v1893_v29 }
 0xe8c   :  { %v954_v40 = vpop.f32.mrf.mxu2 }
 0xe8d   :  { %v955_v61 = vadd.f32 %v1775_v53, %v954_v40 }
 0xe8f   :  { %1477 = vtanh.f32 %v955_v61  ;;  %v1351_v9 = vmul.f32 -1.442695, %v955_v61 }
 0xe91   :  { %1479 = vpow2.f32 %v1351_v9 }
 0xe94   :  { %v956_v62 = vpop.f32.mrf.mxu2 }
 0xe95   :  { %v1478_v7 = vpop.eup %1477 }
 0xe96   :  { %980 = vrot.lane.b32.xlu0 %v1478_v7, %s1648_s17 }
 0xe97   :  { %v1480_v10 = vpop.eup %1479 }
 0xe98   :  { %v961_v11 = vadd.f32 1.0, %v1480_v10 }
 0xe9a   :  { %1481 = vrcp.f32 %v961_v11  ;;  %v973_v17 = vand.u32 2147483648, %v961_v11  ;;  %vm967_vm12 = vweird.f32 %v961_v11  ;;  %v971_v18 = vand.u32 2147483647, %v961_v11 }
 0xe9c   :  { %v974_v20 = vor.u32 1.1754944e-38, %v973_v17  ;;  %vm972_vm14 = vcmp.eq.f32.partialorder %v971_v18, 8.507059e+37 }
 0xea0   :  { %v1482_v12 = vpop.eup %1481 }
 0xea1   :  { %v963_v13 = vmul.f32 %v1482_v12, %v961_v11  ;;  %vm968_vm11 = vweird.f32 %v1482_v12 }
 0xea2   :  { %vm969_vm13 = vmor %vm967_vm12, %vm968_vm11 }
 0xea3   :  { %v1041_v6 = vpop.permute.xlu2 %1040  ;;  %v964_v14 = vsub.f32 1.0, %v963_v13 }
 0xea4   :  { %v1043_v53 = vmul.f32 %v1041_v6, %v1035_v8 }
 0xea5   :  { %v965_v15 = vmul.f32 %v1482_v12, %v964_v14 }
 0xea6   :  { %1045 = vrot.lane.b32.xlu1 %v1043_v53, %s1648_s17 }
 0xea7   :  { %v966_v16 = vadd.f32 %v1482_v12, %v965_v15 }
 0xea9   :  { %v970_v19 = vsel %vm969_vm13, %v1482_v12, %v966_v16 }
 0xeaa   :  { %v975_v22 = vsel %vm972_vm14, %v974_v20, %v970_v19 }
 0xeab   :  { %v978_v28 = vmul.f32 %v975_v22, %v1898_v35 }
 0xf08   :  { %v981_v21 = vpop.permute.xlu0 %980 }
 0xf09   :  { %v983_v23 = vmul.f32 %v981_v21, %v975_v22 }
 0xf0b   :  { %985 = vrot.lane.b32.xlu2 %v983_v23, %s1648_s17 }
 0xf18   :  { %v1046_v25 = vpop.permute.xlu1 %1045 }
 0xf19   :  { %v1923_v26 = vadd.f32 %v1046_v25, %v1038_v24 }
 0xf1b   :  { %1483 = vtanh.f32 %v1923_v26 }
 0xf21   :  { %v1484_v27 = vpop.eup %1483 }
 0xf22   :  { %1051 = vrot.lane.b32.xlu0 %v1484_v27, %s1648_s17 }
 0xf65   :  { %v986_v30 = vpop.permute.xlu2 %985 }
 0xf66   :  { %v1928_v31 = vadd.f32 %v986_v30, %v978_v28 }
 0xf68   :  { %1485 = vtanh.f32 %v1928_v31 }
 0xf6e   :  { %v1486_v33 = vpop.eup %1485 }
 0xf6f   :  { %991 = vrot.lane.b32.xlu1 %v1486_v33, %s1648_s17 }
 0xf94   :  { %v1052_v43 = vpop.permute.xlu0 %1051 }
 0xf95   :  { %v1054_v29 = vmul.f32 %v1052_v43, %v1035_v8 }
 0xf97   :  { %1056 = vrot.lane.b32.xlu0 %v1054_v29, %s1642_s29  ;;  %v1120_v44 = vpack.c.bf16 %v1054_v29, %v1054_v29 }
 0xf99   :  { %1122 = vrot.lane.b32.xlu2 %v1120_v44, %s1642_s29 }
 0xfe1   :  { %v992_v37 = vpop.permute.xlu1 %991 }
 0xfe2   :  { %v994_v47 = vmul.f32 %v992_v37, %v975_v22 }
 0xfe4   :  { %1060 = vrot.lane.b32.xlu1 %v994_v47, %s1649_s20 }
 0xff3   :  { %v1123_v35 = vpop.permute.xlu2 %1122 }
 0xff4   :  { %1356 = vmatmul.msk.bf16.vlgmr.msra.gmra.mxu3 %vm92_vm0, %v1123_v35 }
0x1009   :  { %v1057_v38 = vpop.permute.xlu0 %1056 }
0x1056   :  { %v1061_v49 = vpop.permute.xlu1 %1060 }
0x1057   :  { %v1063_v34 = vsel %vm92_vm0, %v1057_v38, %v1061_v49 }
0x1058   :  { %v1064_v45 = vpack.c.bf16 %v1063_v34, %v1063_v34 }
0x105a   :  { %1354 = vmatmul.msk.bf16.vlgmr.msra.gmra.mxu1 %vm322_vm6, %v1064_v45 }
0x1077   :  { %v1136_v39 = vpop.f32.mrf.mxu3 }
0x1078   :  { %v1140_v32 = vadd.f32 %v1136_v39, %v202_v50 }
0x107a   :  { %1487 = vtanh.f32 %v1140_v32  ;;  %v1357_v54 = vmul.f32 -1.442695, %v1140_v32 }
0x107c   :  { %1489 = vpow2.f32 %v1357_v54 }
0x107f   :  { %v1138_v48 = vpop.f32.mrf.mxu3 }
0x1080   :  { %v1488_v51 = vpop.eup %1487 }
0x1081   :  { %1163 = vrot.lane.b32.xlu0 %v1488_v51, %s1648_s17 }
0x1082   :  { %v1490_v55 = vpop.eup %1489 }
0x1083   :  { %v1144_v56 = vadd.f32 1.0, %v1490_v55 }
0x1085   :  { %1491 = vrcp.f32 %v1144_v56  ;;  %v1156_v42 = vand.u32 2147483648, %v1144_v56  ;;  %vm1150_vm2 = vweird.f32 %v1144_v56  ;;  %v1154_v62 = vand.u32 2147483647, %v1144_v56 }
0x1087   :  { %v1157_v7 = vor.u32 1.1754944e-38, %v1156_v42  ;;  %vm1155_vm4 = vcmp.eq.f32.partialorder %v1154_v62, 8.507059e+37 }
0x108b   :  { %v1492_v46 = vpop.eup %1491 }
0x108c   :  { %v1146_v60 = vmul.f32 %v1492_v46, %v1144_v56  ;;  %vm1151_vm15 = vweird.f32 %v1492_v46 }
0x108d   :  { %vm1152_vm3 = vmor %vm1150_vm2, %vm1151_vm15 }
0x108e   :  { %v1147_v40 = vsub.f32 1.0, %v1146_v60 }
0x1090   :  { %v1148_v41 = vmul.f32 %v1492_v46, %v1147_v40 }
0x1092   :  { %v1149_v61 = vadd.f32 %v1492_v46, %v1148_v41 }
0x1094   :  { %v1153_v63 = vsel %vm1152_vm3, %v1492_v46, %v1149_v61 }
0x1095   :  { %v1158_v2 = vsel %vm1155_vm4, %v1157_v7, %v1153_v63 }
0x1096   :  { %v1161_v18 = vmul.f32 %v1158_v2, %v1923_v26 }
0x10d7   :  { %v1077_v57 = vpop.f32.mrf.mxu1 }
0x10d8   :  { %v1078_v52 = vadd.f32 %v1944_v58, %v1077_v57 }
0x10da   :  { %1493 = vtanh.f32 %v1078_v52  ;;  %v1355_v1 = vmul.f32 -1.442695, %v1078_v52 }
0x10dc   :  { %1495 = vpow2.f32 %v1355_v1 }
0x10df   :  { %v1079_v59 = vpop.f32.mrf.mxu1 }
0x10e0   :  { %v1494_v36 = vpop.eup %1493 }
0x10e1   :  { %1103 = vrot.lane.b32.xlu2 %v1494_v36, %s1648_s17 }
0x10e2   :  { %v1496_v3 = vpop.eup %1495 }
0x10e3   :  { %v1084_v5 = vadd.f32 1.0, %v1496_v3 }
0x10e5   :  { %1497 = vrcp.f32 %v1084_v5  ;;  %v1096_v11 = vand.u32 2147483648, %v1084_v5  ;;  %vm1090_vm7 = vweird.f32 %v1084_v5  ;;  %v1094_v12 = vand.u32 2147483647, %v1084_v5 }
0x10e7   :  { %v1097_v14 = vor.u32 1.1754944e-38, %v1096_v11  ;;  %vm1095_vm8 = vcmp.eq.f32.partialorder %v1094_v12, 8.507059e+37 }
0x10eb   :  { %v1498_v6 = vpop.eup %1497 }
0x10ec   :  { %v1086_v8 = vmul.f32 %v1498_v6, %v1084_v5  ;;  %vm1091_vm5 = vweird.f32 %v1498_v6 }
0x10ed   :  { %vm1092_vm1 = vmor %vm1090_vm7, %vm1091_vm5 }
0x10ee   :  { %v1087_v53 = vsub.f32 1.0, %v1086_v8 }
0x10f0   :  { %v1088_v9 = vmul.f32 %v1498_v6, %v1087_v53 }
0x10f2   :  { %v1089_v10 = vadd.f32 %v1498_v6, %v1088_v9 }
0x10f3   :  { %v1164_v0 = vpop.permute.xlu0 %1163 }
0x10f4   :  { %v1166_v4 = vmul.f32 %v1164_v0, %v1158_v2  ;;  %v1093_v13 = vsel %vm1092_vm1, %v1498_v6, %v1089_v10 }
0x10f5   :  { %v1098_v16 = vsel %vm1095_vm8, %v1097_v14, %v1093_v13 }
0x10f6   :  { %1168 = vrot.lane.b32.xlu2 %v1166_v4, %s1648_s17  ;;  %v1101_v22 = vmul.f32 %v1098_v16, %v1928_v31 }
0x113b   :  { %v1104_v15 = vpop.permute.xlu2 %1103 }
0x113c   :  { %v1106_v17 = vmul.f32 %v1104_v15, %v1098_v16 }
0x113e   :  { %1108 = vrot.lane.b32.xlu1 %v1106_v17, %s1648_s17 }
0x1150   :  { %v1169_v19 = vpop.permute.xlu2 %1168 }
0x1151   :  { %v1171_v20 = vadd.f32 %v1169_v19, %v1161_v18 }
0x1153   :  { %1499 = vtanh.f32 %v1171_v20 }
0x1159   :  { %v1500_v21 = vpop.eup %1499 }
0x115a   :  { %1174 = vrot.lane.b32.xlu1 %v1500_v21, %s1648_s17 }
0x11b0   :  { %v1109_v23 = vpop.permute.xlu1 %1108 }
0x11b1   :  { %v1111_v24 = vadd.f32 %v1109_v23, %v1101_v22 }
0x11b3   :  { %1501 = vtanh.f32 %v1111_v24 }
0x11b9   :  { %v1502_v25 = vpop.eup %1501 }
0x11ba   :  { %1114 = vrot.lane.b32.xlu0 %v1502_v25, %s1648_s17 }
0x11cc   :  { %v1175_v27 = vpop.permute.xlu1 %1174 }
0x11cd   :  { %v1177_v28 = vmul.f32 %v1175_v27, %v1158_v2 }
0x11cf   :  { %1179 = vrot.lane.b32.xlu2 %v1177_v28, %s1642_s29 }
0x1229   :  { %v1180_v30 = vpop.permute.xlu2 %1179 }
0x122a   :  { %1241 = vst.msk [vmem:[#allocation3] sm:$0xff] %vm92_vm0, %v1180_v30 }
0x122c   :  { %v1115_v26 = vpop.permute.xlu0 %1114 }
0x122d   :  { %v1117_v33 = vmul.f32 %v1115_v26, %v1098_v16 }
0x122f   :  { %1183 = vrot.lane.b32.xlu0 %v1117_v33, %s1649_s20 }
0x12a1   :  { %v1184_v43 = vpop.permute.xlu0 %1183 }
0x12a2   :  { %v1186_v31 = vsel %vm92_vm0, %v1180_v30, %v1184_v43 }
0x12a3   :  { %v1187_v29 = vpack.c.bf16 %v1186_v31, %v1186_v31 }
0x12a5   :  { %1358 = vmatmul.msk.bf16.vlgmr.msra.gmra.mxu2 %vm322_vm6, %v1187_v29 }
0x1328   :  { %v1200_v44 = vpop.f32.mrf.mxu2 }
0x1329   :  { %v1201_v37 = vadd.f32 %v1944_v58, %v1200_v44 }
0x132b   :  { %1503 = vtanh.f32 %v1201_v37  ;;  %v1359_v38 = vmul.f32 -1.442695, %v1201_v37 }
0x132d   :  { %1505 = vpow2.f32 %v1359_v38 }
0x1330   :  { %v1202_v47 = vpop.f32.mrf.mxu2 }
0x1331   :  { %v1504_v35 = vpop.eup %1503 }
0x1332   :  { %1226 = vrot.lane.b32.xlu1 %v1504_v35, %s1648_s17 }
0x1333   :  { %v1506_v49 = vpop.eup %1505 }
0x1334   :  { %v1207_v34 = vadd.f32 1.0, %v1506_v49 }
0x1336   :  { %1507 = vrcp.f32 %v1207_v34  ;;  %v1219_v51 = vand.u32 2147483648, %v1207_v34  ;;  %vm1213_vm6 = vweird.f32 %v1207_v34  ;;  %v1217_v54 = vand.u32 2147483647, %v1207_v34 }
0x1338   :  { %v1220_v56 = vor.u32 1.1754944e-38, %v1219_v51  ;;  %vm1218_vm11 = vcmp.eq.f32.partialorder %v1217_v54, 8.507059e+37 }
0x133c   :  { %v1508_v45 = vpop.eup %1507 }
0x133d   :  { %v1209_v50 = vmul.f32 %v1508_v45, %v1207_v34  ;;  %vm1214_vm9 = vweird.f32 %v1508_v45 }
0x133e   :  { %vm1215_vm10 = vmor %vm1213_vm6, %vm1214_vm9 }
0x133f   :  { %v1210_v39 = vsub.f32 1.0, %v1209_v50 }
0x1341   :  { %v1211_v32 = vmul.f32 %v1508_v45, %v1210_v39 }
0x1343   :  { %v1212_v48 = vadd.f32 %v1508_v45, %v1211_v32 }
0x1345   :  { %v1216_v55 = vsel %vm1215_vm10, %v1508_v45, %v1212_v48 }
0x1346   :  { %v1221_v58 = vsel %vm1218_vm11, %v1220_v56, %v1216_v55 }
0x1347   :  { %v1224_v46 = vmul.f32 %v1221_v58, %v1111_v24 }
0x13a4   :  { %v1227_v57 = vpop.permute.xlu1 %1226 }
0x13a5   :  { %v1229_v52 = vmul.f32 %v1227_v57, %v1221_v58 }
0x13a7   :  { %1231 = vrot.lane.b32.xlu2 %v1229_v52, %s1648_s17 }
0x13af   :  { %1243 = vrot.lane.b32.xlu2 %v1171_v20, %s1649_s20 }
0x1401   :  { %v1232_v59 = vpop.permute.xlu2 %1231 }
0x1402   :  { %v1234_v36 = vadd.f32 %v1232_v59, %v1224_v46 }
0x1404   :  { %1509 = vtanh.f32 %v1234_v36 }
0x1409   :  { %v1244_v60 = vpop.permute.xlu2 %1243 }
0x140a   :  { %v1510_v40 = vpop.eup %1509  ;;  %1246 = vst.msk [vmem:[#allocation4] sm:$0xff] %vm92_vm0, %v1244_v60 }
0x140b   :  { %1237 = vrot.lane.b32.xlu0 %v1510_v40, %s1648_s17 }
0x1413   :  { %1253 = vrot.lane.b32.xlu0 %v1234_v36, %s1649_s20 }
0x147d   :  { %v1238_v41 = vpop.permute.xlu0 %1237 }
0x147e   :  { %v1240_v61 = vmul.f32 %v1238_v41, %v1221_v58 }
0x1480   :  { %1248 = vrot.lane.b32.xlu1 %v1240_v61, %s1642_s29 }
0x1485   :  { %v1254_v42 = vpop.permute.xlu0 %1253 }
0x1486   :  { %1256 = vst.msk [vmem:[#allocation6] sm:$0xff] %vm92_vm0, %v1254_v42 }
0x14f2   :  { %v1249_v62 = vpop.permute.xlu1 %1248 }
0x14f3   :  { %1251 = vst.msk [vmem:[#allocation5] sm:$0xff] %vm92_vm0, %v1249_v62 }
0x14f4   :  { %1260 = vst.msk [vmem:[#allocation15] sm:$0xff] %vm92_vm0, %v1249_v62 }
0x14f5   :  { %1271 = dma.vmem_to_hbm [thread:$0]  %s1267_s24, 128, %s1269_s27, [#allocation9]  }
0x14f6   :  { %1639 = dma.done.wait [#allocation9], 128  }
0x14f7   :  { %1640 = vsyncadd [#allocation9], 4294967168 }
0x14f8   :  { %1276 = vsyncpa [#allocation8], 1 }
0x14f9   :  { %1277 = vsyncpa [#allocation11], 1 }
0x14fa   :  { %1278 = vsyncpa [#allocation14], 1 }
0x14fb   :  { %1279 = vsyncpa [#allocation9], 1 }

</bundles_post_ra>
